<compile_context>
chip_gen: v7x
topology: tpu7x:2x2x1
jax: 0.10.0
libtpu: 0.0.40
codegen_flags: <defaults>
</compile_context>

<pallas_src>
import functools

import jax
import jax.numpy as jnp
import numpy as np
from jax import lax
from jax.experimental import pallas as pl
from jax.experimental.pallas import tpu as pltpu


def _se_bottleneck_kernel(x_ref, w1_ref, s1_ref, b1_ref,
                          w2_ref, s2_ref, b2_ref,
                          w3_ref, s3_ref, b3_ref,
                          wse1_ref, wse2_ref,
                          out_ref, pad_ref, *, H, W, P, Nb, pad):
    """Processes Nb images.  x_ref: (Nb, H*W, 4P) in the compute dtype (bf16/f32)."""
    HW = H * W
    C4 = 4 * P
    cdt = w1_ref.dtype            # matmul operand dtype (bf16 by default)
    f32 = jnp.float32

    x = x_ref[...]                                    # (Nb, HW, C4)
    x2d = x.reshape(Nb * HW, C4)                      # fold batch into matmul M

    # ---- conv1 (1x1) + bn1 + relu : single matmul, f32 accumulate ----------
    h1 = jnp.dot(x2d, w1_ref[...], preferred_element_type=f32)
    h1 = jnp.maximum(h1 * s1_ref[...] + b1_ref[...], 0.0)        # (Nb*HW, P) f32
    h1c = h1.astype(cdt).reshape(Nb, HW, P)

    # ---- conv2 (3x3, pad=1, stride=1) + bn2 + relu --------------------------
    # Write h1 once into a compute-dtype halo-padded scratch; each tap is a
    # statically offset slice of it (zero halo handles the row boundaries),
    # multiplied with a (P, P) weight and accumulated in f32 registers.
    pad_ref[:, 0:pad, :] = jnp.zeros((Nb, pad, P), cdt)
    pad_ref[:, pad + HW:2 * pad + HW, :] = jnp.zeros((Nb, pad, P), cdt)
    pad_ref[:, pad:pad + HW, :] = h1c

    # Column-boundary masks, hoisted out of the tap loop.
    xx = lax.broadcasted_iota(jnp.int32, (1, HW, 1), 1) % W
    not_left = xx > 0
    not_right = xx < W - 1

    acc2 = jnp.zeros((Nb * HW, P), f32)
    for dy in range(3):
        for dx in range(3):
            t = dy * 3 + dx
            off = (dy - 1) * W + (dx - 1)             # flat spatial offset
            tap = pad_ref[:, pad + off:pad + off + HW, :]     # (Nb, HW, P) cdt
            if dx == 0:
                tap = jnp.where(not_left, tap, 0)
            elif dx == 2:
                tap = jnp.where(not_right, tap, 0)
            acc2 = acc2 + jnp.dot(tap.reshape(Nb * HW, P), w2_ref[t],
                                  preferred_element_type=f32)

    h2 = jnp.maximum(acc2 * s2_ref[...] + b2_ref[...], 0.0)     # (Nb*HW, P) f32

    # ---- conv3 (1x1) + bn3 ---------------------------------------------------
    h3 = jnp.dot(h2.astype(cdt), w3_ref[...], preferred_element_type=f32)
    h3 = h3 * s3_ref[...] + b3_ref[...]                          # (Nb*HW, C4) f32
    h3_3d = h3.reshape(Nb, HW, C4)

    # ---- SE: per-image global avg pool -> FC -> ReLU -> FC -> sigmoid -------
    # (SE Linear layers are bias-free per the module spec; kept in f32.)
    y = jnp.mean(h3_3d, axis=1)                                  # (Nb, C4) f32
    z = jnp.maximum(jnp.dot(y, wse1_ref[...], preferred_element_type=f32), 0.0)
    gate = jax.nn.sigmoid(jnp.dot(z, wse2_ref[...],
                                  preferred_element_type=f32))   # (Nb, C4) f32

    # ---- gate, residual add (downsample=None -> residual = x), final relu ---
    out = jnp.maximum(h3_3d * gate[:, None, :] + x.astype(f32), 0.0)
    out_ref[...] = out.astype(out_ref.dtype)


def prepare_params(params, compute_dtype=jnp.bfloat16):
    """One-time parameter prep (cast conv weights, reshape w2 tap-major)."""
    if params.get("_prepared", False):
        return params
    cdt = compute_dtype
    f32 = jnp.float32
    P = params["w1"].shape[1]
    return dict(
        _prepared=True,
        w1=params["w1"].astype(cdt),                      # (C4, P)
        w2=params["w2"].reshape(9, P, P).astype(cdt),     # HWIO -> (tap, in, out)
        w3=params["w3"].astype(cdt),                      # (P, C4)
        wse1=params["wse1"].astype(f32),                  # SE FCs stay f32
        wse2=params["wse2"].astype(f32),
        s1=params["s1"].astype(f32), b1=params["b1"].astype(f32),
        s2=params["s2"].astype(f32), b2=params["b2"].astype(f32),
        s3=params["s3"].astype(f32), b3=params["b3"].astype(f32),
    )


def se_bottleneck_forward_nhwc(x_nhwc, params, *, compute_dtype=jnp.bfloat16,
                               batch_blocks=1):
    """Fused SEBottleneck forward on NHWC input.  Returns NHWC in compute dtype.

    batch_blocks: 1 (default) runs the whole batch in one grid step — correct
    choice on single-TensorCore chips (v5e, v6e).  On v7x (2 TCs/chip) pass 2
    so the "parallel" batch axis can shard across cores.
    """
    N, H, W, Cin = x_nhwc.shape
    pp = prepare_params(params, compute_dtype)
    cdt = pp["w1"].dtype
    f32 = jnp.float32

    P = pp["w1"].shape[1]
    C4 = 4 * P
    assert Cin == C4, "downsample=None requires inplanes == planes * 4"
    assert H >= 2 and W >= 2
    HW = H * W
    hidden = pp["wse1"].shape[1]
    assert hidden >= 1, "SE hidden dim (channel/reduction) must be >= 1"

    assert batch_blocks >= 1 and N % batch_blocks == 0
    block_n = N // batch_blocks

    # Sublane-aligned halo for the conv2 padded scratch.
    pad = ((W + 1 + 15) // 16) * 16

    x_flat = x_nhwc.reshape(N, HW, Cin).astype(cdt)

    kernel = functools.partial(_se_bottleneck_kernel,
                               H=H, W=W, P=P, Nb=block_n, pad=pad)

    rep2 = lambda b: (0, 0)
    rep3 = lambda b: (0, 0, 0)
    in_specs = [
        pl.BlockSpec((block_n, HW, Cin), lambda b: (b, 0, 0)),    # x
        pl.BlockSpec((Cin, P), rep2),                             # w1
        pl.BlockSpec((1, P), rep2), pl.BlockSpec((1, P), rep2),   # s1, b1
        pl.BlockSpec((9, P, P), rep3),                            # w2 (tap-major)
        pl.BlockSpec((1, P), rep2), pl.BlockSpec((1, P), rep2),   # s2, b2
        pl.BlockSpec((P, C4), rep2),                              # w3
        pl.BlockSpec((1, C4), rep2), pl.BlockSpec((1, C4), rep2), # s3, b3
        pl.BlockSpec((C4, hidden), rep2),                         # se fc1 (f32)
        pl.BlockSpec((hidden, C4), rep2),                         # se fc2 (f32)
    ]

    # Explicit VMEM budget (double-buffered x/out blocks + weights + scratch +
    # f32 intermediates), clamped to v7x's 64 MiB physical VMEM.
    elem = jnp.dtype(cdt).itemsize
    io_block = block_n * HW * C4 * elem
    pad_block = block_n * (HW + 2 * pad) * P * elem
    w_bytes = ((Cin * P + 9 * P * P + P * C4) * elem
               + 2 * C4 * hidden * 4 + 6 * (P + C4) * 4)
    interm = block_n * HW * (4 * P + 3 * C4) * 4
    need = 4 * io_block + pad_block + 2 * w_bytes + interm + (4 << 20)
    vmem_limit = int(min(max(need, 32 << 20), 64 << 20))

    out_flat = pl.pallas_call(
        kernel,
        out_shape=jax.ShapeDtypeStruct((N, HW, C4), cdt),
        grid=(batch_blocks,),
        in_specs=in_specs,
        out_specs=pl.BlockSpec((block_n, HW, C4), lambda b: (b, 0, 0)),
        scratch_shapes=[pltpu.VMEM((block_n, HW + 2 * pad, P), cdt)],
        input_output_aliases={0: 0},   # output reuses x_flat's HBM buffer
        compiler_params=pltpu.CompilerParams(
            dimension_semantics=("parallel",),
            vmem_limit_bytes=vmem_limit),
    )(x_flat, pp["w1"], pp["s1"], pp["b1"], pp["w2"], pp["s2"], pp["b2"],
      pp["w3"], pp["s3"], pp["b3"], pp["wse1"], pp["wse2"])

    return out_flat.reshape(N, H, W, C4)


def se_bottleneck_forward(x_nchw, params, **kwargs):
    """NCHW (PyTorch-layout) convenience wrapper.

    Prefer `se_bottleneck_forward_nhwc` inside an NHWC pipeline: the two
    transposes here are full HBM round trips.
    """
    x = jnp.transpose(x_nchw, (0, 2, 3, 1))
    out = se_bottleneck_forward_nhwc(x, params, **kwargs)
    return jnp.transpose(out, (0, 3, 1, 2))


def _fold_bn(gamma, beta, mean, var, eps=1e-5):
    scale = gamma / jnp.sqrt(var + eps)
    bias = beta - mean * scale
    return scale[None, :], bias[None, :]


def make_params(key, planes=8, reduction=16):
    Cin = planes * 4
    C4 = planes * 4
    hidden = int(C4 / reduction)
    ks = jax.random.split(key, 20)
    norm = lambda k, shape, s=0.1: (jax.random.normal(k, shape, jnp.float32) * s)
    unif = lambda k, shape: jax.random.uniform(k, shape, jnp.float32, 0.5, 1.5)

    w1 = norm(ks[0], (Cin, planes))                      # conv1: (O,I,1,1) -> (I,O)
    w2 = norm(ks[1], (3, 3, planes, planes))             # conv2 as HWIO
    w3 = norm(ks[2], (planes, C4))                       # conv3: (O,I,1,1) -> (I,O)

    s1, b1 = _fold_bn(unif(ks[3], (planes,)), norm(ks[4], (planes,)),
                      norm(ks[5], (planes,)), unif(ks[6], (planes,)))
    s2, b2 = _fold_bn(unif(ks[7], (planes,)), norm(ks[8], (planes,)),
                      norm(ks[9], (planes,)), unif(ks[10], (planes,)))
    s3, b3 = _fold_bn(unif(ks[11], (C4,)), norm(ks[12], (C4,)),
                      norm(ks[13], (C4,)), unif(ks[14], (C4,)))

    wse1 = norm(ks[15], (C4, hidden), 0.3)               # Linear(C4, hidden) -> W^T
    wse2 = norm(ks[16], (hidden, C4), 0.3)               # Linear(hidden, C4) -> W^T

    return dict(w1=w1, s1=s1, b1=b1, w2=w2, s2=s2, b2=b2,
                w3=w3, s3=s3, b3=b3, wse1=wse1, wse2=wse2)


def reference_forward(x_nchw, params, compute_dtype=jnp.float32):
    """Pure-JAX reference (mirrors the PyTorch forward with eval-mode BN).

    `compute_dtype` mirrors the kernel's mixed-precision conv operands; the SE
    FCs stay f32 (as in the kernel).  float32 reproduces the module exactly.
    """
    q = lambda a: a.astype(compute_dtype).astype(jnp.float32)
    x = jnp.transpose(x_nchw, (0, 2, 3, 1))
    relu = lambda v: jnp.maximum(v, 0.0)
    xq = q(x)
    h1 = relu(jnp.einsum("nhwc,cd->nhwd", xq, q(params["w1"]))
              * params["s1"][0] + params["b1"][0])
    h2 = lax.conv_general_dilated(
        q(h1), q(params["w2"]), (1, 1), "SAME",
        dimension_numbers=("NHWC", "HWIO", "NHWC"))
    h2 = relu(h2 * params["s2"][0] + params["b2"][0])
    h3 = jnp.einsum("nhwc,cd->nhwd", q(h2), q(params["w3"])) \
         * params["s3"][0] + params["b3"][0]
    y = jnp.mean(h3, axis=(1, 2))
    z = relu(y @ params["wse1"])
    gate = jax.nn.sigmoid(z @ params["wse2"])[:, None, None, :]
    out = relu(h3 * gate + xq)
    return jnp.transpose(out, (0, 3, 1, 2))


if __name__ == "__main__":
    N, planes, Hs, Ws = 2, 8, 8, 8
    Cin = planes * 4  # 32 -- inplanes == planes*4 so the residual add is valid

    key = jax.random.PRNGKey(0)
    kx, kp = jax.random.split(key)
    x = jax.random.normal(kx, (N, Cin, Hs, Ws), jnp.float32)
    params = make_params(kp, planes=planes, reduction=16)

    # Fast path: bf16 DMA / matmul operands, f32 accumulate + BN/SE math.
    pp_bf16 = prepare_params(params, jnp.bfloat16)
    out_bf16 = jax.block_until_ready(se_bottleneck_forward(x, pp_bf16))
    ref_bf16 = reference_forward(x, params, compute_dtype=jnp.bfloat16)
    np.testing.assert_allclose(np.asarray(out_bf16.astype(jnp.float32)),
                               np.asarray(ref_bf16), rtol=1e-2, atol=1e-2)

    # Full float32 path reproduces the original module's numerics.
    pp_f32 = prepare_params(params, jnp.float32)
    out_f32 = jax.block_until_ready(
        se_bottleneck_forward(x, pp_f32, compute_dtype=jnp.float32))
    ref_f32 = reference_forward(x, params, compute_dtype=jnp.float32)
    np.testing.assert_allclose(np.asarray(out_f32), np.asarray(ref_f32),
                               rtol=1e-4, atol=1e-4)

    print("KERNEL_OK")
</pallas_src>

<mosaic_0001>
module attributes {stable_mosaic.version = 11 : i64} {
  func.func @_se_bottleneck_kernel(%arg0: i32, %arg1: memref<2x64x32xbf16, #tpu.memory_space<vmem>>, %arg2: memref<32x8xbf16, #tpu.memory_space<vmem>>, %arg3: memref<1x8xf32, #tpu.memory_space<vmem>>, %arg4: memref<1x8xf32, #tpu.memory_space<vmem>>, %arg5: memref<9x8x8xbf16, #tpu.memory_space<vmem>>, %arg6: memref<1x8xf32, #tpu.memory_space<vmem>>, %arg7: memref<1x8xf32, #tpu.memory_space<vmem>>, %arg8: memref<8x32xbf16, #tpu.memory_space<vmem>>, %arg9: memref<1x32xf32, #tpu.memory_space<vmem>>, %arg10: memref<1x32xf32, #tpu.memory_space<vmem>>, %arg11: memref<32x2xf32, #tpu.memory_space<vmem>>, %arg12: memref<2x32xf32, #tpu.memory_space<vmem>>, %arg13: memref<2x64x32xbf16, #tpu.memory_space<vmem>>, %arg14: memref<2x96x8xbf16, #tpu.memory_space<vmem>>) attributes {dimension_semantics = [#tpu.dimension_semantics<parallel>], iteration_bounds = array<i64: 1>, scalar_prefetch = 0 : i64, scratch_operands = 1 : i64, tpu.core_type = #tpu.core_type<tc>, window_params = [{transform_indices = @transform_0, window_bounds = array<i64: 2, 64, 32>}, {pipeline_mode = #tpu.pipeline_mode<synchronous>, transform_indices = @transform_1, window_bounds = array<i64: 32, 8>}, {pipeline_mode = #tpu.pipeline_mode<synchronous>, transform_indices = @transform_2, window_bounds = array<i64: 1, 8>}, {pipeline_mode = #tpu.pipeline_mode<synchronous>, transform_indices = @transform_3, window_bounds = array<i64: 1, 8>}, {pipeline_mode = #tpu.pipeline_mode<synchronous>, transform_indices = @transform_4, window_bounds = array<i64: 9, 8, 8>}, {pipeline_mode = #tpu.pipeline_mode<synchronous>, transform_indices = @transform_5, window_bounds = array<i64: 1, 8>}, {pipeline_mode = #tpu.pipeline_mode<synchronous>, transform_indices = @transform_6, window_bounds = array<i64: 1, 8>}, {pipeline_mode = #tpu.pipeline_mode<synchronous>, transform_indices = @transform_7, window_bounds = array<i64: 8, 32>}, {pipeline_mode = #tpu.pipeline_mode<synchronous>, transform_indices = @transform_8, window_bounds = array<i64: 1, 32>}, {pipeline_mode = #tpu.pipeline_mode<synchronous>, transform_indices = @transform_9, window_bounds = array<i64: 1, 32>}, {pipeline_mode = #tpu.pipeline_mode<synchronous>, transform_indices = @transform_10, window_bounds = array<i64: 32, 2>}, {pipeline_mode = #tpu.pipeline_mode<synchronous>, transform_indices = @transform_11, window_bounds = array<i64: 2, 32>}, {transform_indices = @transform_12, window_bounds = array<i64: 2, 64, 32>}]} {
    %c0 = arith.constant 0 : index
    %c0_0 = arith.constant 0 : index
    %c0_1 = arith.constant 0 : index
    %0 = vector.load %arg1[%c0, %c0_0, %c0_1] : memref<2x64x32xbf16, #tpu.memory_space<vmem>>, vector<2x64x32xbf16>
    %1 = vector.shape_cast %0 : vector<2x64x32xbf16> to vector<128x32xbf16>
    %c0_2 = arith.constant 0 : index
    %c0_3 = arith.constant 0 : index
    %2 = vector.load %arg2[%c0_2, %c0_3] : memref<32x8xbf16, #tpu.memory_space<vmem>>, vector<32x8xbf16>
    %cst = arith.constant dense<0.000000e+00> : vector<128x8xf32>
    %3 = tpu.matmul %1, %2, %cst {dimension_numbers = #tpu.dot_dimension_numbers<[1], [0], [0], [1], [0, 0, 1, 1], [], []>} : vector<128x32xbf16>, vector<32x8xbf16>, vector<128x8xf32> -> vector<128x8xf32>
    %c0_4 = arith.constant 0 : index
    %c0_5 = arith.constant 0 : index
    %4 = vector.load %arg3[%c0_4, %c0_5] : memref<1x8xf32, #tpu.memory_space<vmem>>, vector<1x8xf32>
    %5 = vector.broadcast %4 : vector<1x8xf32> to vector<128x8xf32>
    %6 = arith.mulf %3, %5 : vector<128x8xf32>
    %c0_6 = arith.constant 0 : index
    %c0_7 = arith.constant 0 : index
    %7 = vector.load %arg4[%c0_6, %c0_7] : memref<1x8xf32, #tpu.memory_space<vmem>>, vector<1x8xf32>
    %8 = vector.broadcast %7 : vector<1x8xf32> to vector<128x8xf32>
    %9 = arith.addf %6, %8 : vector<128x8xf32>
    %cst_8 = arith.constant 0.000000e+00 : f32
    %10 = vector.broadcast %cst_8 : f32 to vector<128x8xf32>
    %11 = arith.maximumf %9, %10 : vector<128x8xf32>
    %12 = arith.truncf %11 : vector<128x8xf32> to vector<128x8xbf16>
    %13 = vector.shape_cast %12 : vector<128x8xbf16> to vector<2x64x8xbf16>
    %cst_9 = arith.constant 0.000000e+00 : bf16
    %14 = vector.broadcast %cst_9 : bf16 to vector<2x16x8xbf16>
    %c0_10 = arith.constant 0 : index
    %c0_11 = arith.constant 0 : index
    %c0_12 = arith.constant 0 : index
    %15 = vector.load %arg14[%c0_10, %c0_11, %c0_12] : memref<2x96x8xbf16, #tpu.memory_space<vmem>>, vector<2x16x8xbf16>
    tpu.vector_store %arg14[%c0_10, %c0_11, %c0_12], %14 {strides = array<i32>} : memref<2x96x8xbf16, #tpu.memory_space<vmem>>, vector<2x16x8xbf16>,
    %cst_13 = arith.constant 0.000000e+00 : bf16
    %16 = vector.broadcast %cst_13 : bf16 to vector<2x16x8xbf16>
    %c0_14 = arith.constant 0 : index
    %c80 = arith.constant 80 : index
    %c0_15 = arith.constant 0 : index
    %17 = vector.load %arg14[%c0_14, %c80, %c0_15] : memref<2x96x8xbf16, #tpu.memory_space<vmem>>, vector<2x16x8xbf16>
    tpu.vector_store %arg14[%c0_14, %c80, %c0_15], %16 {strides = array<i32>} : memref<2x96x8xbf16, #tpu.memory_space<vmem>>, vector<2x16x8xbf16>,
    %c0_16 = arith.constant 0 : index
    %c16 = arith.constant 16 : index
    %c0_17 = arith.constant 0 : index
    %18 = vector.load %arg14[%c0_16, %c16, %c0_17] : memref<2x96x8xbf16, #tpu.memory_space<vmem>>, vector<2x64x8xbf16>
    tpu.vector_store %arg14[%c0_16, %c16, %c0_17], %13 {strides = array<i32>} : memref<2x96x8xbf16, #tpu.memory_space<vmem>>, vector<2x64x8xbf16>,
    %19 = tpu.iota {dimensions = array<i32: 1>} : vector<1x64x1xi32>
    %c8_i32 = arith.constant 8 : i32
    %c0_i32 = arith.constant 0 : i32
    %20 = arith.cmpi eq, %c8_i32, %c0_i32 : i32
    %c1_i32 = arith.constant 1 : i32
    %21 = arith.select %20, %c1_i32, %c8_i32 : i32
    %22 = vector.broadcast %21 : i32 to vector<1x64x1xi32>
    %23 = arith.remsi %19, %22 : vector<1x64x1xi32>
    %c0_i32_18 = arith.constant 0 : i32
    %24 = vector.broadcast %c0_i32_18 : i32 to vector<1x64x1xi32>
    %25 = arith.cmpi ne, %23, %24 : vector<1x64x1xi32>
    %c0_i32_19 = arith.constant 0 : i32
    %26 = vector.broadcast %c0_i32_19 : i32 to vector<1x64x1xi32>
    %27 = arith.cmpi slt, %23, %26 : vector<1x64x1xi32>
    %c0_i32_20 = arith.constant 0 : i32
    %28 = arith.cmpi slt, %21, %c0_i32_20 : i32
    %29 = vector.broadcast %28 : i1 to vector<1x64x1xi1>
    %30 = vector.broadcast %29 : vector<1x64x1xi1> to vector<1x64x1xi1>
    %31 = arith.xori %27, %30 : vector<1x64x1xi1>
    %32 = arith.andi %31, %25 : vector<1x64x1xi1>
    %33 = vector.broadcast %21 : i32 to vector<1x64x1xi32>
    %34 = arith.addi %23, %33 : vector<1x64x1xi32>
    %35 = arith.select %32, %34, %23 : vector<1x64x1xi1>, vector<1x64x1xi32>
    %c0_i32_21 = arith.constant 0 : i32
    %36 = vector.broadcast %c0_i32_21 : i32 to vector<1x64x1xi32>
    %37 = arith.cmpi sgt, %35, %36 : vector<1x64x1xi32>
    %c7_i32 = arith.constant 7 : i32
    %38 = vector.broadcast %c7_i32 : i32 to vector<1x64x1xi32>
    %39 = arith.cmpi slt, %35, %38 : vector<1x64x1xi32>
    %cst_22 = arith.constant 0.000000e+00 : f32
    %40 = vector.broadcast %cst_22 : f32 to vector<128x8xf32>
    %c0_23 = arith.constant 0 : index
    %c7 = arith.constant 7 : index
    %c0_24 = arith.constant 0 : index
    %41 = vector.load %arg14[%c0_23, %c7, %c0_24] : memref<2x96x8xbf16, #tpu.memory_space<vmem>>, vector<2x64x8xbf16>
    %c0_i32_25 = arith.constant 0 : i32
    %42 = arith.sitofp %c0_i32_25 : i32 to bf16
    %43 = vector.shape_cast %37 : vector<1x64x1xi1> to vector<1x64x1xi1>
    %44 = vector.broadcast %43 : vector<1x64x1xi1> to vector<2x64x8xi1>
    %45 = vector.broadcast %42 : bf16 to vector<2x64x8xbf16>
    %46 = arith.select %44, %41, %45 : vector<2x64x8xi1>, vector<2x64x8xbf16>
    %47 = vector.shape_cast %46 : vector<2x64x8xbf16> to vector<128x8xbf16>
    %c0_26 = arith.constant 0 : index
    %c0_27 = arith.constant 0 : index
    %c0_28 = arith.constant 0 : index
    %48 = vector.load %arg5[%c0_26, %c0_27, %c0_28] : memref<9x8x8xbf16, #tpu.memory_space<vmem>>, vector<1x8x8xbf16>
    %49 = vector.shape_cast %48 : vector<1x8x8xbf16> to vector<8x8xbf16>
    %cst_29 = arith.constant dense<0.000000e+00> : vector<128x8xf32>
    %50 = tpu.matmul %47, %49, %cst_29 {dimension_numbers = #tpu.dot_dimension_numbers<[1], [0], [0], [1], [0, 0, 1, 1], [], []>} : vector<128x8xbf16>, vector<8x8xbf16>, vector<128x8xf32> -> vector<128x8xf32>
    %51 = arith.addf %40, %50 : vector<128x8xf32>
    %c0_30 = arith.constant 0 : index
    %c8 = arith.constant 8 : index
    %c0_31 = arith.constant 0 : index
    %52 = vector.load %arg14[%c0_30, %c8, %c0_31] : memref<2x96x8xbf16, #tpu.memory_space<vmem>>, vector<2x64x8xbf16>
    %53 = vector.shape_cast %52 : vector<2x64x8xbf16> to vector<128x8xbf16>
    %c1 = arith.constant 1 : index
    %c0_32 = arith.constant 0 : index
    %c0_33 = arith.constant 0 : index
    %54 = vector.load %arg5[%c1, %c0_32, %c0_33] : memref<9x8x8xbf16, #tpu.memory_space<vmem>>, vector<1x8x8xbf16>
    %55 = vector.shape_cast %54 : vector<1x8x8xbf16> to vector<8x8xbf16>
    %cst_34 = arith.constant dense<0.000000e+00> : vector<128x8xf32>
    %56 = tpu.matmul %53, %55, %cst_34 {dimension_numbers = #tpu.dot_dimension_numbers<[1], [0], [0], [1], [0, 0, 1, 1], [], []>} : vector<128x8xbf16>, vector<8x8xbf16>, vector<128x8xf32> -> vector<128x8xf32>
    %57 = arith.addf %51, %56 : vector<128x8xf32>
    %c0_35 = arith.constant 0 : index
    %c9 = arith.constant 9 : index
    %c0_36 = arith.constant 0 : index
    %58 = vector.load %arg14[%c0_35, %c9, %c0_36] : memref<2x96x8xbf16, #tpu.memory_space<vmem>>, vector<2x64x8xbf16>
    %c0_i32_37 = arith.constant 0 : i32
    %59 = arith.sitofp %c0_i32_37 : i32 to bf16
    %60 = vector.shape_cast %39 : vector<1x64x1xi1> to vector<1x64x1xi1>
    %61 = vector.broadcast %60 : vector<1x64x1xi1> to vector<2x64x8xi1>
    %62 = vector.broadcast %59 : bf16 to vector<2x64x8xbf16>
    %63 = arith.select %61, %58, %62 : vector<2x64x8xi1>, vector<2x64x8xbf16>
    %64 = vector.shape_cast %63 : vector<2x64x8xbf16> to vector<128x8xbf16>
    %c2 = arith.constant 2 : index
    %c0_38 = arith.constant 0 : index
    %c0_39 = arith.constant 0 : index
    %65 = vector.load %arg5[%c2, %c0_38, %c0_39] : memref<9x8x8xbf16, #tpu.memory_space<vmem>>, vector<1x8x8xbf16>
    %66 = vector.shape_cast %65 : vector<1x8x8xbf16> to vector<8x8xbf16>
    %cst_40 = arith.constant dense<0.000000e+00> : vector<128x8xf32>
    %67 = tpu.matmul %64, %66, %cst_40 {dimension_numbers = #tpu.dot_dimension_numbers<[1], [0], [0], [1], [0, 0, 1, 1], [], []>} : vector<128x8xbf16>, vector<8x8xbf16>, vector<128x8xf32> -> vector<128x8xf32>
    %68 = arith.addf %57, %67 : vector<128x8xf32>
    %c0_41 = arith.constant 0 : index
    %c15 = arith.constant 15 : index
    %c0_42 = arith.constant 0 : index
    %69 = vector.load %arg14[%c0_41, %c15, %c0_42] : memref<2x96x8xbf16, #tpu.memory_space<vmem>>, vector<2x64x8xbf16>
    %c0_i32_43 = arith.constant 0 : i32
    %70 = arith.sitofp %c0_i32_43 : i32 to bf16
    %71 = vector.shape_cast %37 : vector<1x64x1xi1> to vector<1x64x1xi1>
    %72 = vector.broadcast %71 : vector<1x64x1xi1> to vector<2x64x8xi1>
    %73 = vector.broadcast %70 : bf16 to vector<2x64x8xbf16>
    %74 = arith.select %72, %69, %73 : vector<2x64x8xi1>, vector<2x64x8xbf16>
    %75 = vector.shape_cast %74 : vector<2x64x8xbf16> to vector<128x8xbf16>
    %c3 = arith.constant 3 : index
    %c0_44 = arith.constant 0 : index
    %c0_45 = arith.constant 0 : index
    %76 = vector.load %arg5[%c3, %c0_44, %c0_45] : memref<9x8x8xbf16, #tpu.memory_space<vmem>>, vector<1x8x8xbf16>
    %77 = vector.shape_cast %76 : vector<1x8x8xbf16> to vector<8x8xbf16>
    %cst_46 = arith.constant dense<0.000000e+00> : vector<128x8xf32>
    %78 = tpu.matmul %75, %77, %cst_46 {dimension_numbers = #tpu.dot_dimension_numbers<[1], [0], [0], [1], [0, 0, 1, 1], [], []>} : vector<128x8xbf16>, vector<8x8xbf16>, vector<128x8xf32> -> vector<128x8xf32>
    %79 = arith.addf %68, %78 : vector<128x8xf32>
    %c0_47 = arith.constant 0 : index
    %c16_48 = arith.constant 16 : index
    %c0_49 = arith.constant 0 : index
    %80 = vector.load %arg14[%c0_47, %c16_48, %c0_49] : memref<2x96x8xbf16, #tpu.memory_space<vmem>>, vector<2x64x8xbf16>
    %81 = vector.shape_cast %80 : vector<2x64x8xbf16> to vector<128x8xbf16>
    %c4 = arith.constant 4 : index
    %c0_50 = arith.constant 0 : index
    %c0_51 = arith.constant 0 : index
    %82 = vector.load %arg5[%c4, %c0_50, %c0_51] : memref<9x8x8xbf16, #tpu.memory_space<vmem>>, vector<1x8x8xbf16>
    %83 = vector.shape_cast %82 : vector<1x8x8xbf16> to vector<8x8xbf16>
    %cst_52 = arith.constant dense<0.000000e+00> : vector<128x8xf32>
    %84 = tpu.matmul %81, %83, %cst_52 {dimension_numbers = #tpu.dot_dimension_numbers<[1], [0], [0], [1], [0, 0, 1, 1], [], []>} : vector<128x8xbf16>, vector<8x8xbf16>, vector<128x8xf32> -> vector<128x8xf32>
    %85 = arith.addf %79, %84 : vector<128x8xf32>
    %c0_53 = arith.constant 0 : index
    %c17 = arith.constant 17 : index
    %c0_54 = arith.constant 0 : index
    %86 = vector.load %arg14[%c0_53, %c17, %c0_54] : memref<2x96x8xbf16, #tpu.memory_space<vmem>>, vector<2x64x8xbf16>
    %c0_i32_55 = arith.constant 0 : i32
    %87 = arith.sitofp %c0_i32_55 : i32 to bf16
    %88 = vector.shape_cast %39 : vector<1x64x1xi1> to vector<1x64x1xi1>
    %89 = vector.broadcast %88 : vector<1x64x1xi1> to vector<2x64x8xi1>
    %90 = vector.broadcast %87 : bf16 to vector<2x64x8xbf16>
    %91 = arith.select %89, %86, %90 : vector<2x64x8xi1>, vector<2x64x8xbf16>
    %92 = vector.shape_cast %91 : vector<2x64x8xbf16> to vector<128x8xbf16>
    %c5 = arith.constant 5 : index
    %c0_56 = arith.constant 0 : index
    %c0_57 = arith.constant 0 : index
    %93 = vector.load %arg5[%c5, %c0_56, %c0_57] : memref<9x8x8xbf16, #tpu.memory_space<vmem>>, vector<1x8x8xbf16>
    %94 = vector.shape_cast %93 : vector<1x8x8xbf16> to vector<8x8xbf16>
    %cst_58 = arith.constant dense<0.000000e+00> : vector<128x8xf32>
    %95 = tpu.matmul %92, %94, %cst_58 {dimension_numbers = #tpu.dot_dimension_numbers<[1], [0], [0], [1], [0, 0, 1, 1], [], []>} : vector<128x8xbf16>, vector<8x8xbf16>, vector<128x8xf32> -> vector<128x8xf32>
    %96 = arith.addf %85, %95 : vector<128x8xf32>
    %c0_59 = arith.constant 0 : index
    %c23 = arith.constant 23 : index
    %c0_60 = arith.constant 0 : index
    %97 = vector.load %arg14[%c0_59, %c23, %c0_60] : memref<2x96x8xbf16, #tpu.memory_space<vmem>>, vector<2x64x8xbf16>
    %c0_i32_61 = arith.constant 0 : i32
    %98 = arith.sitofp %c0_i32_61 : i32 to bf16
    %99 = vector.shape_cast %37 : vector<1x64x1xi1> to vector<1x64x1xi1>
    %100 = vector.broadcast %99 : vector<1x64x1xi1> to vector<2x64x8xi1>
    %101 = vector.broadcast %98 : bf16 to vector<2x64x8xbf16>
    %102 = arith.select %100, %97, %101 : vector<2x64x8xi1>, vector<2x64x8xbf16>
    %103 = vector.shape_cast %102 : vector<2x64x8xbf16> to vector<128x8xbf16>
    %c6 = arith.constant 6 : index
    %c0_62 = arith.constant 0 : index
    %c0_63 = arith.constant 0 : index
    %104 = vector.load %arg5[%c6, %c0_62, %c0_63] : memref<9x8x8xbf16, #tpu.memory_space<vmem>>, vector<1x8x8xbf16>
    %105 = vector.shape_cast %104 : vector<1x8x8xbf16> to vector<8x8xbf16>
    %cst_64 = arith.constant dense<0.000000e+00> : vector<128x8xf32>
    %106 = tpu.matmul %103, %105, %cst_64 {dimension_numbers = #tpu.dot_dimension_numbers<[1], [0], [0], [1], [0, 0, 1, 1], [], []>} : vector<128x8xbf16>, vector<8x8xbf16>, vector<128x8xf32> -> vector<128x8xf32>
    %107 = arith.addf %96, %106 : vector<128x8xf32>
    %c0_65 = arith.constant 0 : index
    %c24 = arith.constant 24 : index
    %c0_66 = arith.constant 0 : index
    %108 = vector.load %arg14[%c0_65, %c24, %c0_66] : memref<2x96x8xbf16, #tpu.memory_space<vmem>>, vector<2x64x8xbf16>
    %109 = vector.shape_cast %108 : vector<2x64x8xbf16> to vector<128x8xbf16>
    %c7_67 = arith.constant 7 : index
    %c0_68 = arith.constant 0 : index
    %c0_69 = arith.constant 0 : index
    %110 = vector.load %arg5[%c7_67, %c0_68, %c0_69] : memref<9x8x8xbf16, #tpu.memory_space<vmem>>, vector<1x8x8xbf16>
    %111 = vector.shape_cast %110 : vector<1x8x8xbf16> to vector<8x8xbf16>
    %cst_70 = arith.constant dense<0.000000e+00> : vector<128x8xf32>
    %112 = tpu.matmul %109, %111, %cst_70 {dimension_numbers = #tpu.dot_dimension_numbers<[1], [0], [0], [1], [0, 0, 1, 1], [], []>} : vector<128x8xbf16>, vector<8x8xbf16>, vector<128x8xf32> -> vector<128x8xf32>
    %113 = arith.addf %107, %112 : vector<128x8xf32>
    %c0_71 = arith.constant 0 : index
    %c25 = arith.constant 25 : index
    %c0_72 = arith.constant 0 : index
    %114 = vector.load %arg14[%c0_71, %c25, %c0_72] : memref<2x96x8xbf16, #tpu.memory_space<vmem>>, vector<2x64x8xbf16>
    %c0_i32_73 = arith.constant 0 : i32
    %115 = arith.sitofp %c0_i32_73 : i32 to bf16
    %116 = vector.shape_cast %39 : vector<1x64x1xi1> to vector<1x64x1xi1>
    %117 = vector.broadcast %116 : vector<1x64x1xi1> to vector<2x64x8xi1>
    %118 = vector.broadcast %115 : bf16 to vector<2x64x8xbf16>
    %119 = arith.select %117, %114, %118 : vector<2x64x8xi1>, vector<2x64x8xbf16>
    %120 = vector.shape_cast %119 : vector<2x64x8xbf16> to vector<128x8xbf16>
    %c8_74 = arith.constant 8 : index
    %c0_75 = arith.constant 0 : index
    %c0_76 = arith.constant 0 : index
    %121 = vector.load %arg5[%c8_74, %c0_75, %c0_76] : memref<9x8x8xbf16, #tpu.memory_space<vmem>>, vector<1x8x8xbf16>
    %122 = vector.shape_cast %121 : vector<1x8x8xbf16> to vector<8x8xbf16>
    %cst_77 = arith.constant dense<0.000000e+00> : vector<128x8xf32>
    %123 = tpu.matmul %120, %122, %cst_77 {dimension_numbers = #tpu.dot_dimension_numbers<[1], [0], [0], [1], [0, 0, 1, 1], [], []>} : vector<128x8xbf16>, vector<8x8xbf16>, vector<128x8xf32> -> vector<128x8xf32>
    %124 = arith.addf %113, %123 : vector<128x8xf32>
    %c0_78 = arith.constant 0 : index
    %c0_79 = arith.constant 0 : index
    %125 = vector.load %arg6[%c0_78, %c0_79] : memref<1x8xf32, #tpu.memory_space<vmem>>, vector<1x8xf32>
    %126 = vector.broadcast %125 : vector<1x8xf32> to vector<128x8xf32>
    %127 = arith.mulf %124, %126 : vector<128x8xf32>
    %c0_80 = arith.constant 0 : index
    %c0_81 = arith.constant 0 : index
    %128 = vector.load %arg7[%c0_80, %c0_81] : memref<1x8xf32, #tpu.memory_space<vmem>>, vector<1x8xf32>
    %129 = vector.broadcast %128 : vector<1x8xf32> to vector<128x8xf32>
    %130 = arith.addf %127, %129 : vector<128x8xf32>
    %cst_82 = arith.constant 0.000000e+00 : f32
    %131 = vector.broadcast %cst_82 : f32 to vector<128x8xf32>
    %132 = arith.maximumf %130, %131 : vector<128x8xf32>
    %133 = arith.truncf %132 : vector<128x8xf32> to vector<128x8xbf16>
    %c0_83 = arith.constant 0 : index
    %c0_84 = arith.constant 0 : index
    %134 = vector.load %arg8[%c0_83, %c0_84] : memref<8x32xbf16, #tpu.memory_space<vmem>>, vector<8x32xbf16>
    %cst_85 = arith.constant dense<0.000000e+00> : vector<128x32xf32>
    %135 = tpu.matmul %133, %134, %cst_85 {dimension_numbers = #tpu.dot_dimension_numbers<[1], [0], [0], [1], [0, 0, 1, 1], [], []>} : vector<128x8xbf16>, vector<8x32xbf16>, vector<128x32xf32> -> vector<128x32xf32>
    %c0_86 = arith.constant 0 : index
    %c0_87 = arith.constant 0 : index
    %136 = vector.load %arg9[%c0_86, %c0_87] : memref<1x32xf32, #tpu.memory_space<vmem>>, vector<1x32xf32>
    %137 = vector.broadcast %136 : vector<1x32xf32> to vector<128x32xf32>
    %138 = arith.mulf %135, %137 : vector<128x32xf32>
    %c0_88 = arith.constant 0 : index
    %c0_89 = arith.constant 0 : index
    %139 = vector.load %arg10[%c0_88, %c0_89] : memref<1x32xf32, #tpu.memory_space<vmem>>, vector<1x32xf32>
    %140 = vector.broadcast %139 : vector<1x32xf32> to vector<128x32xf32>
    %141 = arith.addf %138, %140 : vector<128x32xf32>
    %142 = vector.shape_cast %141 : vector<128x32xf32> to vector<2x64x32xf32>
    %cst_90 = arith.constant dense<0.000000e+00> : vector<2x32xf32>
    %143 = vector.multi_reduction <add>, %142, %cst_90 [1] : vector<2x64x32xf32> to vector<2x32xf32>
    %cst_91 = arith.constant 6.400000e+01 : f32
    %144 = vector.broadcast %cst_91 : f32 to vector<2x32xf32>
    %145 = arith.divf %143, %144 : vector<2x32xf32>
    %c0_92 = arith.constant 0 : index
    %c0_93 = arith.constant 0 : index
    %146 = vector.load %arg11[%c0_92, %c0_93] : memref<32x2xf32, #tpu.memory_space<vmem>>, vector<32x2xf32>
    %cst_94 = arith.constant dense<0.000000e+00> : vector<2x2xf32>
    %147 = tpu.matmul %145, %146, %cst_94 {dimension_numbers = #tpu.dot_dimension_numbers<[1], [0], [0], [1], [0, 0, 1, 1], [], []>} : vector<2x32xf32>, vector<32x2xf32>, vector<2x2xf32> -> vector<2x2xf32>
    %cst_95 = arith.constant 0.000000e+00 : f32
    %148 = vector.broadcast %cst_95 : f32 to vector<2x2xf32>
    %149 = arith.maximumf %147, %148 : vector<2x2xf32>
    %c0_96 = arith.constant 0 : index
    %c0_97 = arith.constant 0 : index
    %150 = vector.load %arg12[%c0_96, %c0_97] : memref<2x32xf32, #tpu.memory_space<vmem>>, vector<2x32xf32>
    %cst_98 = arith.constant dense<0.000000e+00> : vector<2x32xf32>
    %151 = tpu.matmul %149, %150, %cst_98 {dimension_numbers = #tpu.dot_dimension_numbers<[1], [0], [0], [1], [0, 0, 1, 1], [], []>} : vector<2x2xf32>, vector<2x32xf32>, vector<2x32xf32> -> vector<2x32xf32>
    %152 = arith.negf %151 : vector<2x32xf32>
    %153 = math.exp %152 : vector<2x32xf32>
    %cst_99 = arith.constant 1.000000e+00 : f32
    %154 = vector.broadcast %cst_99 : f32 to vector<2x32xf32>
    %155 = arith.addf %154, %153 : vector<2x32xf32>
    %156 = arith.divf %154, %155 : vector<2x32xf32>
    %157 = vector.shape_cast %156 : vector<2x32xf32> to vector<2x1x32xf32>
    %158 = vector.broadcast %157 : vector<2x1x32xf32> to vector<2x64x32xf32>
    %159 = arith.mulf %142, %158 : vector<2x64x32xf32>
    %160 = arith.extf %0 : vector<2x64x32xbf16> to vector<2x64x32xf32>
    %161 = arith.addf %159, %160 : vector<2x64x32xf32>
    %cst_100 = arith.constant 0.000000e+00 : f32
    %162 = vector.broadcast %cst_100 : f32 to vector<2x64x32xf32>
    %163 = arith.maximumf %161, %162 : vector<2x64x32xf32>
    %164 = arith.truncf %163 : vector<2x64x32xf32> to vector<2x64x32xbf16>
    %c0_101 = arith.constant 0 : index
    %c0_102 = arith.constant 0 : index
    %c0_103 = arith.constant 0 : index
    %165 = vector.load %arg13[%c0_101, %c0_102, %c0_103] : memref<2x64x32xbf16, #tpu.memory_space<vmem>>, vector<2x64x32xbf16>
    tpu.vector_store %arg13[%c0_101, %c0_102, %c0_103], %164 {strides = array<i32>} : memref<2x64x32xbf16, #tpu.memory_space<vmem>>, vector<2x64x32xbf16>,
    return
  }
  func.func @transform_0(%arg0: i32) -> (i32, i32, i32) {
    %c0_i32 = arith.constant 0 : i32
    %c0_i32_0 = arith.constant 0 : i32
    %c0_i32_1 = arith.constant 0 : i32
    return %arg0, %c0_i32, %c0_i32_0 : i32, i32, i32
  }
  func.func @transform_1(%arg0: i32) -> (i32, i32) {
    %c0_i32 = arith.constant 0 : i32
    %c0_i32_0 = arith.constant 0 : i32
    %c0_i32_1 = arith.constant 0 : i32
    return %c0_i32, %c0_i32_0 : i32, i32
  }
  func.func @transform_2(%arg0: i32) -> (i32, i32) {
    %c0_i32 = arith.constant 0 : i32
    %c0_i32_0 = arith.constant 0 : i32
    %c0_i32_1 = arith.constant 0 : i32
    return %c0_i32, %c0_i32_0 : i32, i32
  }
  func.func @transform_3(%arg0: i32) -> (i32, i32) {
    %c0_i32 = arith.constant 0 : i32
    %c0_i32_0 = arith.constant 0 : i32
    %c0_i32_1 = arith.constant 0 : i32
    return %c0_i32, %c0_i32_0 : i32, i32
  }
  func.func @transform_4(%arg0: i32) -> (i32, i32, i32) {
    %c0_i32 = arith.constant 0 : i32
    %c0_i32_0 = arith.constant 0 : i32
    %c0_i32_1 = arith.constant 0 : i32
    %c0_i32_2 = arith.constant 0 : i32
    return %c0_i32, %c0_i32_0, %c0_i32_1 : i32, i32, i32
  }
  func.func @transform_5(%arg0: i32) -> (i32, i32) {
    %c0_i32 = arith.constant 0 : i32
    %c0_i32_0 = arith.constant 0 : i32
    %c0_i32_1 = arith.constant 0 : i32
    return %c0_i32, %c0_i32_0 : i32, i32
  }
  func.func @transform_6(%arg0: i32) -> (i32, i32) {
    %c0_i32 = arith.constant 0 : i32
    %c0_i32_0 = arith.constant 0 : i32
    %c0_i32_1 = arith.constant 0 : i32
    return %c0_i32, %c0_i32_0 : i32, i32
  }
  func.func @transform_7(%arg0: i32) -> (i32, i32) {
    %c0_i32 = arith.constant 0 : i32
    %c0_i32_0 = arith.constant 0 : i32
    %c0_i32_1 = arith.constant 0 : i32
    return %c0_i32, %c0_i32_0 : i32, i32
  }
  func.func @transform_8(%arg0: i32) -> (i32, i32) {
    %c0_i32 = arith.constant 0 : i32
    %c0_i32_0 = arith.constant 0 : i32
    %c0_i32_1 = arith.constant 0 : i32
    return %c0_i32, %c0_i32_0 : i32, i32
  }
  func.func @transform_9(%arg0: i32) -> (i32, i32) {
    %c0_i32 = arith.constant 0 : i32
    %c0_i32_0 = arith.constant 0 : i32
    %c0_i32_1 = arith.constant 0 : i32
    return %c0_i32, %c0_i32_0 : i32, i32
  }
  func.func @transform_10(%arg0: i32) -> (i32, i32) {
    %c0_i32 = arith.constant 0 : i32
    %c0_i32_0 = arith.constant 0 : i32
    %c0_i32_1 = arith.constant 0 : i32
    return %c0_i32, %c0_i32_0 : i32, i32
  }
  func.func @transform_11(%arg0: i32) -> (i32, i32) {
    %c0_i32 = arith.constant 0 : i32
    %c0_i32_0 = arith.constant 0 : i32
    %c0_i32_1 = arith.constant 0 : i32
    return %c0_i32, %c0_i32_0 : i32, i32
  }
  func.func @transform_12(%arg0: i32) -> (i32, i32, i32) {
    %c0_i32 = arith.constant 0 : i32
    %c0_i32_0 = arith.constant 0 : i32
    %c0_i32_1 = arith.constant 0 : i32
    return %arg0, %c0_i32, %c0_i32_0 : i32, i32, i32
  }
}

</mosaic_0001>

<bundles_post_ra>
// kernel: tpu_custom_call.1
= control target key start
LH: loop header
LB: loop body
LE: loop exit
PB: predicated region body
PF: predicated region fallthrough
CT: control target
= control target key end

     0   :  { %vm5184_vm0 = vcmask 261120   ;;  %vm308_vm1 = vcmask 64512   ;;  %v3837_v10 = vmov 0   ;;  %vm5197_vm2 = vcmask 1043456   ;;  %s5171_s1 = inlined_call_operand.vmem [shape: bf16[32,8], index: 1, kind: input, shape index: {}]   ;;  %s5172_s0 = inlined_call_operand.vmem [shape: bf16[2,64,32], index: 0, kind: input, shape index: {}, may-alias: {0,12}]   ;;  %s5173_s4 = inlined_call_operand.vmem [shape: bf16[9,8,8], index: 4, kind: input, shape index: {}]   ;;  %s5174_s2 = inlined_call_operand.vmem [shape: f32[1,8], index: 2, kind: input, shape index: {}]   ;;  %s5175_s3 = inlined_call_operand.vmem [shape: f32[1,8], index: 3, kind: input, shape index: {}]   ;;  %s5176_s7 = inlined_call_operand.vmem [shape: bf16[8,32], index: 7, kind: input, shape index: {}]   ;;  %s5177_s5 = inlined_call_operand.vmem [shape: f32[1,8], index: 5, kind: input, shape index: {}]   ;;  %s5178_s6 = inlined_call_operand.vmem [shape: f32[1,8], index: 6, kind: input, shape index: {}]   ;;  %s5179_s10 = inlined_call_operand.vmem [shape: f32[32,2], index: 10, kind: input, shape index: {}]   ;;  %s5180_s8 = inlined_call_operand.vmem [shape: f32[1,32], index: 8, kind: input, shape index: {}]   ;;  %s5181_s9 = inlined_call_operand.vmem [shape: f32[1,32], index: 9, kind: input, shape index: {}]   ;;  %s5182_s11 = inlined_call_operand.vmem [shape: f32[2,32], index: 11, kind: input, shape index: {}]   ;;  %s5183_s12 = inlined_call_operand.vmem [shape: bf16[2,64,32], index: 12, kind: output, shape index: {}, may-alias: {0,12}]  }
   0x1   :  { %v3806_v0 = vld [vmem:[%s5171_s1] sm:$0xff]   ;;  %v3807_v1 = vld [vmem:[%s5171_s1 + $0x8] sm:$0xff]   ;;  %v48_v4 = vld [vmem:[%s5172_s0 + $0x10] sm:$0xff]   ;;  %309 = vst.msk [vmem:[#allocation2] sm:$0xff] %vm308_vm1, %v3837_v10  ;;  %v321_v17 = vlaneseq }
   0x2   :  { %3438 = vmatprep.subr.bf16.mxu0 %v3806_v0  ;;  %v44_v2 = vld [vmem:[%s5172_s0] sm:$0xff]   ;;  %v46_v3 = vld [vmem:[%s5172_s0 + $0x8] sm:$0xff]   ;;  %v50_v5 = vld [vmem:[%s5172_s0 + $0x18] sm:$0xff]   ;;  %310 = vst.msk [vmem:[#allocation2 + $0x30] sm:$0xff] %vm308_vm1, %v3837_v10 }
   0x3   :  { %3439 = vmatpush3.bf16.msra.mxu0 %v3806_v0  ;;  %3442 = vmatprep.mubr.msk.bf16.mxu0 %vm5184_vm0, %v44_v2  ;;  %v52_v6 = vld [vmem:[%s5172_s0 + $0x20] sm:$0xff]   ;;  %v54_v7 = vld [vmem:[%s5172_s0 + $0x28] sm:$0xff]   ;;  %v56_v8 = vld [vmem:[%s5172_s0 + $0x30] sm:$0xff]   ;;  %311 = vst.msk [vmem:[#allocation2 + $0x28] sm:$0xff] %vm308_vm1, %v3837_v10  ;;  %v3984_v18 = vshrl.u32 %v321_v17, 7 }
   0x4   :  { %3440 = vmatprep.subr.bf16.mxu0 %v3807_v1  ;;  %v58_v9 = vld [vmem:[%s5172_s0 + $0x38] sm:$0xff]   ;;  %312 = vst.msk [vmem:[#allocation2 + $0x58] sm:$0xff] %vm308_vm1, %v3837_v10  ;;  %v3199_v11 = vld [vmem:[%s5173_s4 + $0x4] sm:$0xf]  ;;  %v3961_v13 = vld [vmem:[%s5173_s4 + $0xc] sm:$0xf] }
   0x5   :  { %v696_v12 = vsel %vm5197_vm2, %v3199_v11, 0  ;;  %3794 = vmatprep.subr.msk.bf16.mxu1 %vm5197_vm2, %v3961_v13  ;;  %v3967_v14 = vsel %vm5197_vm2, %v3961_v13, 0  ;;  %v3973_v15 = vld [vmem:[%s5173_s4 + $0x10] sm:$0xf]  ;;  %v3980_v16 = vld [vmem:[%s5173_s4] sm:$0xf] }
   0x6   :  { %3661 = vmatpush3.bf16.msra.mxu1 %v3967_v14  ;;  %5198 = vst [vmem:[#allocation3_spill] sm:$0xff] %v3984_v18  ;;  %v323_v19 = vadd.s32 8, %v3984_v18  ;;  %v334_v20 = vand.u32 7, %v3984_v18  ;;  %v324_v22 = vadd.s32 16, %v3984_v18  ;;  %v325_v23 = vadd.s32 24, %v3984_v18 }
   0x7   :  { %3441 = vmatpush3.bf16.msra.mxu0 %v3807_v1  ;;  %3795 = vmatprep.subr.msk.bf16.mxu1 %vm5197_vm2, %v3973_v15  ;;  %v326_v24 = vadd.s32 32, %v3984_v18  ;;  %v327_v26 = vadd.s32 40, %v3984_v18  ;;  %v3993_v28 = vadd.s32 48, %v3984_v18  ;;  %v3996_v29 = vadd.s32 56, %v3984_v18 }
   0x8   :  { %3790 = vmatprep.subr.msk.bf16.mxu0 %vm5197_vm2, %v3199_v11  ;;  %v341_v21 = vand.u32 7, %v323_v19  ;;  %vm434_vm3 = vcmp.lt.s32.totalorder %v334_v20, 7  ;;  %v348_v25 = vand.u32 7, %v324_v22  ;;  %v355_v27 = vand.u32 7, %v325_v23  ;;  %v4121_v19 = vld [vmem:[%s5175_s3] ss:$0 sm:$0xff] }
   0x9   :  { %vm937_vm5 = vmpackc.low %vm434_vm3, %vm434_vm3  ;;  %v362_v30 = vand.u32 7, %v326_v24  ;;  %v369_v32 = vand.u32 7, %v327_v26  ;;  %v376_v35 = vand.u32 7, %v3993_v28  ;;  %v383_v36 = vand.u32 7, %v3996_v29 }
   0xa   :  { %3443 = vmatmul.mubr.msk.bf16.vlgmr.msra.gmra.mrb[0].mxu0 %vm5184_vm0, %v46_v3  ;;  %vm435_vm4 = vcmp.lt.s32.totalorder %v341_v21, 7  ;;  %vm3998_vm7 = vcmp.gt.s32.totalorder %v348_v25, 0  ;;  %vm429_vm8 = vcmp.gt.s32.totalorder %v355_v27, 0  ;;  %v945_v33 = vsel %vm937_vm5, 65537, %v3837_v10 }
   0xb   :  { %3446 = vmatprep.mubr.msk.bf16.mxu0 %vm5184_vm0, %v48_v4  ;;  %3459 = vmatpush3.bf16.msra.mxu0 %v696_v12  ;;  %vm938_vm6 = vmpackc.low %vm435_vm4, %vm435_vm4  ;;  %vm4009_vm10 = vcmp.gt.s32.totalorder %v362_v30, 0  ;;  %vm431_vm12 = vcmp.gt.s32.totalorder %v369_v32, 0  ;;  %vm4017_vm13 = vcmp.gt.s32.totalorder %v376_v35, 0  ;;  %vm4023_vm14 = vcmp.gt.s32.totalorder %v383_v36, 0  ;;  %v4101_v4 = vld [vmem:[#allocation2] sm:$0xf0] }
   0xc   :  { %3791 = vmatprep.subr.msk.bf16.mxu0 %vm5197_vm2, %v3980_v16  ;;  %v946_v34 = vsel %vm938_vm6, 65537, %v3837_v10  ;;  %vm470_vm9 = vmpackc.low %vm3998_vm7, %vm3998_vm7  ;;  %vm4040_vm6 = vcmp.lt.s32.totalorder %v348_v25, 7  ;;  %vm4048_vm7 = vcmp.gt.s32.totalorder %v334_v20, 0  ;;  %v650_v20 = vrot.slane %v4101_v4, 4 }
   0xd   :  { %vm471_vm11 = vmpackc.low %vm429_vm8, %vm429_vm8  ;;  %v4013_v38 = vcombine.low %v945_v33, %v946_v34  ;;  %v478_v41 = vsel %vm470_vm9, 65537, %v3837_v10  ;;  %vm4052_vm8 = vcmp.lt.s32.totalorder %v355_v27, 7  ;;  %vm4056_vm9 = vcmp.gt.s32.totalorder %v341_v21, 0 }
   0xe   :  { %vm472_vm15 = vmpackc.low %vm4009_vm10, %vm4009_vm10  ;;  %v479_v42 = vsel %vm471_vm11, 65537, %v3837_v10 }
   0xf   :  { %vm473_vm3 = vmpackc.low %vm431_vm12, %vm431_vm12  ;;  %v966_v43 = vshrl.u32 %v4013_v38, 16  ;;  %v5187_v44 = vshll.u32 %v4013_v38, 16  ;;  %v4044_v46 = vcombine.low %v478_v41, %v479_v42  ;;  %v480_v47 = vsel %vm472_vm15, 65537, %v3837_v10 }
  0x10   :  { %vm474_vm4 = vmpackc.low %vm4017_vm13, %vm4017_vm13  ;;  %v481_v48 = vsel %vm473_vm3, 65537, %v3837_v10  ;;  %vm4075_vm12 = vcmp.lt.s32.totalorder %v362_v30, 7  ;;  %vm4090_vm15 = vcmp.lt.s32.totalorder %v369_v32, 7 }
  0x11   :  { %vm475_vm5 = vmpackc.low %vm4023_vm14, %vm4023_vm14  ;;  %v968_v52 = vrot.slane %v966_v43, 3  ;;  %v971_v53 = vrot.slane %v5187_v44, 4  ;;  %v482_v54 = vsel %vm474_vm4, 65537, %v3837_v10  ;;  %v4069_v56 = vcombine.low %v480_v47, %v481_v48 }
  0x12   :  { %3447 = vmatmul.mubr.msk.bf16.gmra.mrb[4].mxu0 %vm5184_vm0, %v50_v5  ;;  %v483_v55 = vsel %vm475_vm5, 65537, %v3837_v10  ;;  %vm939_vm10 = vmpackc.low %vm4040_vm6, %vm4040_vm6  ;;  %v506_v57 = vshrl.u32 %v4044_v46, 16  ;;  %v509_v59 = vshll.u32 %v4044_v46, 16  ;;  %vm5185_vm6 = vsmask.f32 7424 }
  0x13   :  { %3450 = vmatprep.mubr.msk.bf16.mxu0 %vm5184_vm0, %v52_v6  ;;  %vm468_vm11 = vmpackc.low %vm4048_vm7, %vm4048_vm7  ;;  %v4083_v60 = vcombine.low %v482_v54, %v483_v55  ;;  %v4088_v61 = vor.u32 %v971_v53, %v968_v52  ;;  %v947_v63 = vsel %vm939_vm10, 65537, %v3837_v10  ;;  %v515_v1 = vshrl.u32 %v4069_v56, 16 }
  0x14   :  { %vm469_vm13 = vmpackc.low %vm4056_vm9, %vm4056_vm9  ;;  %v508_v0 = vrot.slane %v506_v57, 4  ;;  %v476_v2 = vsel %vm468_vm11, 65537, %v3837_v10  ;;  %v511_v5 = vrot.slane %v509_v59, 5  ;;  %v518_v6 = vshll.u32 %v4069_v56, 16 }
  0x15   :  { %vm940_vm14 = vmpackc.low %vm4052_vm8, %vm4052_vm8  ;;  %v477_v3 = vsel %vm469_vm13, 65537, %v3837_v10  ;;  %vm5186_vm4 = vcmp.ne.s16.totalorder %v4088_v61, 0  ;;  %v527_v22 = vshll.u32 %v4083_v60, 16  ;;  %v517_v27 = vrot.slane %v515_v1, 4 }
  0x16   :  { %vm941_vm3 = vmpackc.low %vm4075_vm12, %vm4075_vm12  ;;  %v4116_v12 = vcombine.low %v476_v2, %v477_v3  ;;  %v4127_v21 = vsel %vm5186_vm4, %v4101_v4, 0  ;;  %v4133_v26 = vor.u32 %v511_v5, %v508_v0  ;;  %v520_v30 = vrot.slane %v518_v6, 5  ;;  %v4261_v4 = vld [vmem:[%s5173_s4 + $0x8] sm:$0xf] }
  0x17   :  { %vm942_vm5 = vmpackc.low %vm4090_vm15, %vm4090_vm15  ;;  %v949_v11 = vsel %vm941_vm3, 65537, %v3837_v10  ;;  %v4144_v37 = vrot.slane %v509_v59, 1  ;;  %v529_v48 = vrot.slane %v527_v22, 5  ;;  %v1255_v52 = vrot.slane %v518_v6, 1 }
  0x18   :  { %v950_v34 = vsel %vm942_vm5, 65537, %v3837_v10  ;;  %v498_v42 = vshrl.u32 %v4116_v12, 16  ;;  %v501_v45 = vshll.u32 %v4116_v12, 16  ;;  %v4153_v50 = vor.u32 %v520_v30, %v517_v27 }
  0x19   :  { %v4155_v51 = vcombine.low %v949_v11, %v950_v34  ;;  %v1254_v54 = vor.u32 %v4144_v37, %v506_v57  ;;  %vm5189_vm7 = vsmask.f32 3328  ;;  %vm547_vm8 = vsmask.f32 4352 }
  0x1a   :  { %3451 = vmatmul.mubr.msk.bf16.gmra.mrb[8].mxu0 %vm5184_vm0, %v54_v7  ;;  %v948_v7 = vsel %vm940_vm14, 65537, %v3837_v10  ;;  %v500_v62 = vrot.slane %v498_v42, 4  ;;  %v4164_v57 = vrot.slane %v501_v45, 1  ;;  %vm4279_vm15 = vcmp.lt.s32.totalorder %v376_v35, 7 }
  0x1b   :  { %3454 = vmatprep.mubr.msk.bf16.mxu0 %vm5184_vm0, %v56_v8  ;;  %v4109_v8 = vld [vmem:[%s5174_s2] ss:$0 sm:$0xff]  ;;  %v4130_v23 = vcombine.low %v947_v63, %v948_v7  ;;  %v503_v63 = vrot.slane %v501_v45, 5  ;;  %v1258_v7 = vrot.slane %v527_v22, 1  ;;  %vm1276_vm3 = vsmask.f32 256 }
  0x1c   :  { %vm1261_vm14 = vcmp.ne.s16.totalorder %v4164_v57, 0 }
  0x1d   :  { %v974_v55 = vshrl.u32 %v4130_v23, 16  ;;  %v5188_v56 = vshll.u32 %v4130_v23, 16  ;;  %v4175_v34 = vor.u32 %v503_v63, %v500_v62  ;;  %v442_v63 = vld [vmem:[#allocation2] sm:$0xf8] }
  0x1f   :  { %v976_v30 = vrot.slane %v974_v55, 3  ;;  %vm5195_vm9 = vcmp.ne.s16.totalorder %v4175_v34, 0 }
  0x22   :  { %3455 = vmatmul.mubr.msk.bf16.gmra.mrb[12].mxu0 %vm5184_vm0, %v58_v9  ;;  %v524_v9 = vshrl.u32 %v4083_v60, 16  ;;  %vm4298_vm0 = vcmp.lt.s32.totalorder %v383_v36, 7 }
  0x24   :  { %v526_v33 = vrot.slane %v524_v9, 4 }
  0x26   :  { %v4161_v5 = vor.u32 %v529_v48, %v526_v33  ;;  %v1251_v48 = vor.u32 %v4164_v57, %v498_v42 }
  0xdd   :  { %v3444_v17 = vpop.f32.mrb[0].mxu0 }
  0xde   :  { %v247_v24 = vmul.f32 %v3444_v17, %v4109_v8  ;;  %v175_v25 = vpop.f32.mrb[1].mxu0  ;;  %v1257_v17 = vor.u32 %v1255_v52, %v515_v1 }
  0xdf   :  { %v245_v31 = vmul.f32 %v4109_v8, %v175_v25  ;;  %v3445_v32 = vpop.f32.mrb[2].mxu0 }
  0xe0   :  { %v270_v39 = vadd.f32 %v4121_v19, %v247_v24  ;;  %v248_v40 = vmul.f32 %v3445_v32, %v4109_v8  ;;  %v178_v41 = vpop.f32.mrb[3].mxu0 }
  0xe1   :  { %v268_v46 = vadd.f32 %v4121_v19, %v245_v31  ;;  %v246_v47 = vmul.f32 %v4109_v8, %v178_v41  ;;  %v979_v31 = vrot.slane %v5188_v56, 4 }
  0xe2   :  { %v271_v49 = vadd.f32 %v4121_v19, %v248_v40  ;;  %v286_v58 = vmax.f32 %v270_v39, 0.0 }
  0xe3   :  { %v269_v53 = vadd.f32 %v4121_v19, %v246_v47  ;;  %v284_v0 = vmax.f32 %v268_v46, 0.0  ;;  %v4183_v46 = vsel %vm5185_vm6, %v1254_v54, %v1255_v52  ;;  %v4187_v47 = vor.u32 %v1258_v7, %v524_v9 }
  0xe4   :  { %v287_v59 = vmax.f32 %v271_v49, 0.0  ;;  %v4199_v52 = vsel %vm5189_vm7, %v4175_v34, %v4133_v26  ;;  %vm1263_vm10 = vcmp.ne.s16.totalorder %v4183_v46, 0  ;;  %v4206_v54 = vsel %vm5189_vm7, %v4133_v26, %v4153_v50 }
  0xe5   :  { %v285_v2 = vmax.f32 %v269_v53, 0.0  ;;  %v3448_v3 = vpop.f32.mrb[4].mxu0  ;;  %v4192_v53 = vsel %vm5185_vm6, %v1257_v17, %v1258_v7  ;;  %v4212_v7 = vsel %vm5185_vm6, %v1251_v48, %v4144_v37  ;;  %vm533_vm12 = vcmp.ne.s16.totalorder %v4199_v52, 0 }
  0xe6   :  { %v301_v11 = vpack.c.bf16 %v287_v59, %v286_v58  ;;  %v251_v6 = vmul.f32 %v3448_v3, %v4109_v8  ;;  %v191_v12 = vpop.f32.mrb[5].mxu0  ;;  %v4194_v58 = vor.u32 %v979_v31, %v976_v30  ;;  %vm1264_vm11 = vcmp.ne.s16.totalorder %v4192_v53, 0 }
  0xe7   :  { %v300_v24 = vpack.c.bf16 %v285_v2, %v284_v0  ;;  %v249_v25 = vmul.f32 %v4109_v8, %v191_v12  ;;  %v3449_v27 = vpop.f32.mrb[6].mxu0  ;;  %v537_v26 = vsel %vm5195_vm9, %v442_v63, 0  ;;  %vm1265_vm13 = vcmp.ne.s16.totalorder %v4187_v47, 0 }
  0xe8   :  { %314 = vst.msk [vmem:[#allocation2 + $0x10] sm:$0xff] %vm308_vm1, %v301_v11  ;;  %v274_v22 = vadd.f32 %v4121_v19, %v251_v6  ;;  %v252_v32 = vmul.f32 %v3449_v27, %v4109_v8  ;;  %v194_v33 = vpop.f32.mrb[7].mxu0  ;;  %v1016_v11 = vshrl.u32 %v4127_v21, 16  ;;  %vm534_vm5 = vcmp.ne.s16.totalorder %v4206_v54, 0 }
  0xe9   :  { %313 = vst.msk [vmem:[#allocation2 + $0x8] sm:$0xff] %vm308_vm1, %v300_v24  ;;  %v272_v39 = vadd.f32 %v4121_v19, %v249_v25  ;;  %v250_v40 = vmul.f32 %v4109_v8, %v194_v33  ;;  %v4224_v25 = vsel %vm547_vm8, %v4088_v61, %v4194_v58  ;;  %vm5190_vm6 = vcmp.ne.s16.totalorder %v4212_v7, 0 }
  0xea   :  { %v275_v45 = vadd.f32 %v4121_v19, %v252_v32  ;;  %v290_v59 = vmax.f32 %v274_v22, 0.0  ;;  %v5224_v47 = vshll.u32 %v4130_v23, 16 }
  0xeb   :  { %v273_v49 = vadd.f32 %v4121_v19, %v250_v40  ;;  %v288_v60 = vmax.f32 %v272_v39, 0.0 }
  0xec   :  { %v291_v62 = vmax.f32 %v275_v45, 0.0 }
  0xed   :  { %v289_v9 = vmax.f32 %v273_v49, 0.0  ;;  %v3452_v42 = vpop.f32.mrb[8].mxu0  ;;  %v549_v49 = vshrl.u32 %v537_v26, 16 }
  0xee   :  { %v303_v0 = vpack.c.bf16 %v291_v62, %v290_v59  ;;  %v255_v2 = vmul.f32 %v3452_v42, %v4109_v8  ;;  %v207_v3 = vpop.f32.mrb[9].mxu0  ;;  %v552_v59 = vshll.u32 %v537_v26, 16  ;;  %v4241_v62 = vrot.slane %v1016_v11, 4  ;;  %v4250_v42 = vld [vmem:[#allocation2 + $0x30] sm:$0xf0] }
  0xef   :  { %v302_v6 = vpack.c.bf16 %v289_v9, %v288_v60  ;;  %v253_v12 = vmul.f32 %v4109_v8, %v207_v3  ;;  %v3453_v17 = vpop.f32.mrb[10].mxu0  ;;  %v4216_v24 = vld [vmem:[#allocation2 + $0x10] sm:$0xff]  ;;  %v1019_v26 = vshll.u32 %v4127_v21, 16 }
  0xf0   :  { %316 = vst.msk [vmem:[#allocation2 + $0x20] sm:$0xff] %vm308_vm1, %v303_v0  ;;  %v278_v37 = vadd.f32 %v4121_v19, %v255_v2  ;;  %v256_v27 = vmul.f32 %v3453_v17, %v4109_v8  ;;  %v210_v30 = vpop.f32.mrb[11].mxu0  ;;  %v4229_v31 = vld [vmem:[#allocation2 + $0x8] sm:$0xff]  ;;  %v653_v22 = vrot.slane %v4216_v24, 4  ;;  %v1268_v32 = vsel %vm1263_vm10, %v4216_v24, 0 }
  0xf1   :  { %315 = vst.msk [vmem:[#allocation2 + $0x18] sm:$0xff] %vm308_vm1, %v302_v6  ;;  %v276_v33 = vadd.f32 %v4121_v19, %v253_v12  ;;  %v254_v39 = vmul.f32 %v4109_v8, %v210_v30  ;;  %v651_v40 = vrot.slane %v4229_v31, 4  ;;  %v1290_v45 = vshrl.u32 %v1268_v32, 16 }
  0xf2   :  { %v279_v48 = vadd.f32 %v4121_v19, %v256_v27  ;;  %v820_v0 = vsel %vm5197_vm2, %v3980_v16, 0  ;;  %v294_v2 = vmax.f32 %v278_v37, 0.0  ;;  %v1293_v6 = vshll.u32 %v1268_v32, 16 }
  0xf3   :  { %v277_v63 = vadd.f32 %v4121_v19, %v254_v39  ;;  %v652_v60 = vsel %vm5197_vm2, %v650_v20, %v651_v40  ;;  %v654_v9 = vsel %vm5197_vm2, %v651_v40, %v653_v22  ;;  %v4255_v11 = vrot.slane %v1290_v45, 7 }
  0xf4   :  { %v295_v3 = vmax.f32 %v279_v48, 0.0  ;;  %3460 = vmatprep.mubr.msk.bf16.mxu0 %vm308_vm1, %v652_v60  ;;  %v292_v20 = vmax.f32 %v276_v33, 0.0  ;;  %v4267_v16 = vsel %vm5189_vm7, %v4153_v50, %v4161_v5  ;;  %v4274_v39 = vrot.slane %v549_v49, 3 }
  0xf5   :  { %v293_v12 = vmax.f32 %v277_v63, 0.0  ;;  %v3456_v17 = vpop.f32.mrb[12].mxu0  ;;  %3461 = vmatmul.mubr.msk.bf16.vlgmr.msra.gmra.mrb[16].mxu0 %vm308_vm1, %v654_v9  ;;  %v4272_v32 = vor.u32 %v1293_v6, %v4255_v11  ;;  %v659_v48 = vrot.slane %v4250_v42, 4  ;;  %v4286_v63 = vrot.slane %v552_v59, 4 }
  0xf6   :  { %v305_v37 = vpack.c.bf16 %v295_v3, %v294_v2  ;;  %v259_v27 = vmul.f32 %v3456_v17, %v4109_v8  ;;  %v223_v30 = vpop.f32.mrb[13].mxu0  ;;  %3477 = vmatpush3.bf16.msra.mxu0 %v820_v0  ;;  %v4306_v0 = vsel %vm5186_vm4, %v4250_v42, 0  ;;  %v1247_v17 = vld [vmem:[#allocation2 + $0x30] sm:$0x80]  ;;  %vm535_vm4 = vcmp.ne.s16.totalorder %v4267_v16, 0 }
  0xf7   :  { %v304_v33 = vpack.c.bf16 %v293_v12, %v292_v20  ;;  %v257_v40 = vmul.f32 %v4109_v8, %v223_v30  ;;  %v3457_v45 = vpop.f32.mrb[14].mxu0  ;;  %v4283_v21 = vld [vmem:[#allocation2 + $0x20] sm:$0xf]  ;;  %3792 = vmatprep.subr.msk.bf16.mxu0 %vm5197_vm2, %v4261_v4  ;;  %v555_v56 = vor.u32 %v4286_v63, %v4274_v39  ;;  %vm5194_vm7 = vcmp.ne.s16.totalorder %v4161_v5, 0 }
  0xf8   :  { %318 = vst.msk [vmem:[#allocation2 + $0x40] sm:$0xff] %vm308_vm1, %v305_v37  ;;  %v282_v28 = vadd.f32 %v4121_v19, %v259_v27  ;;  %v260_v35 = vmul.f32 %v3457_v45, %v4109_v8  ;;  %v226_v49 = vpop.f32.mrb[15].mxu0  ;;  %v4294_v60 = vld [vmem:[#allocation2 + $0x18] sm:$0xff]  ;;  %v657_v59 = vrot.slane %v4283_v21, 4  ;;  %v4317_v36 = vld [vmem:[#allocation2 + $0x20] sm:$0xff]  ;;  %v538_v37 = vsel %vm533_vm12, %v4229_v31, 0 }
  0xf9   :  { %317 = vst.msk [vmem:[#allocation2 + $0x38] sm:$0xff] %vm308_vm1, %v304_v33  ;;  %v280_v2 = vadd.f32 %v4121_v19, %v257_v40  ;;  %v258_v3 = vmul.f32 %v4109_v8, %v226_v49  ;;  %v4312_v6 = vrot.slane %v4294_v60, 4  ;;  %v1269_v29 = vsel %vm1264_vm11, %v4294_v60, 0 }
  0xfa   :  { %v283_v20 = vadd.f32 %v4121_v19, %v260_v35  ;;  %v1298_v12 = vshrl.u32 %v1269_v29, 16  ;;  %v4325_v8 = vrot.slane %v1019_v26, 5  ;;  %v298_v27 = vmax.f32 %v282_v28, 0.0 }
  0xfb   :  { %v281_v30 = vadd.f32 %v4121_v19, %v258_v3  ;;  %v656_v33 = vsel %vm5197_vm2, %v653_v22, %v4312_v6  ;;  %v658_v40 = vsel %vm5197_vm2, %v4312_v6, %v657_v59  ;;  %v1301_v49 = vshll.u32 %v1269_v29, 16 }
  0xfc   :  { %v299_v45 = vmax.f32 %v283_v20, 0.0  ;;  %3464 = vmatprep.mubr.msk.bf16.mxu0 %vm308_vm1, %v656_v33  ;;  %v1300_v35 = vrot.slane %v1298_v12, 7  ;;  %v1270_v26 = vsel %vm1265_vm13, %v4317_v36, 0  ;;  %v296_v28 = vmax.f32 %v280_v2, 0.0 }
  0xfd   :  { %v297_v44 = vmax.f32 %v281_v30, 0.0  ;;  %3465 = vmatmul.mubr.msk.bf16.gmra.mrb[20].mxu0 %vm308_vm1, %v658_v40  ;;  %v1306_v19 = vshrl.u32 %v1270_v26, 16  ;;  %v1271_v22 = vsel %vm1261_vm14, %v1247_v17, 0  ;;  %v557_v59 = vshrl.u32 %v538_v37, 16 }
  0xfe   :  { %v307_v3 = vpack.c.bf16 %v299_v45, %v298_v27  ;;  %v1303_v41 = vor.u32 %v1301_v49, %v1300_v35  ;;  %v560_v20 = vshll.u32 %v538_v37, 16  ;;  %v1309_v12 = vshll.u32 %v1270_v26, 16 }
  0xff   :  { %v306_v1 = vpack.c.bf16 %v297_v44, %v296_v28  ;;  %v4341_v33 = vld [vmem:[#allocation2 + $0x40] sm:$0xff]  ;;  %v1308_v29 = vrot.slane %v1306_v19, 7  ;;  %v1314_v37 = vshrl.u32 %v1271_v22, 16  ;;  %v1518_v45 = vsel %vm5197_vm2, %v3973_v15, 0  ;;  %v4380_v22 = vld [vmem:[%s5173_s4 + $0x14] sm:$0xf] }
 0x100   :  { %320 = vst.msk [vmem:[#allocation2 + $0x50] sm:$0xff] %vm308_vm1, %v307_v3  ;;  %v1273_v2 = vsel %vm1263_vm10, %v4341_v33, 0  ;;  %v1304_v17 = vsel %vm1276_vm3, %v4255_v11, %v1303_v41  ;;  %v4351_v27 = vld [vmem:[#allocation2 + $0x38] sm:$0xff]  ;;  %v4354_v44 = vrot.slane %v4341_v33, 4  ;;  %v559_v11 = vrot.slane %v557_v59, 3  ;;  %vm943_vm10 = vmpackc.low %vm4279_vm15, %vm4279_vm15 }
 0x101   :  { %319 = vst.msk [vmem:[#allocation2 + $0x48] sm:$0xff] %vm308_vm1, %v306_v1  ;;  %v1326_v30 = vshrl.u32 %v1273_v2, 16  ;;  %3518 = vmatprep.mubr.msk.bf16.mxu1 %vm308_vm1, %v1304_v17  ;;  %v1311_v40 = vor.u32 %v1309_v12, %v1308_v29  ;;  %v660_v46 = vrot.slane %v4351_v27, 4  ;;  %v1272_v41 = vsel %vm5190_vm6, %v4351_v27, 0  ;;  %vm944_vm6 = vmpackc.low %vm4298_vm0, %vm4298_vm0 }
 0x102   :  { %v562_v49 = vrot.slane %v560_v20, 4  ;;  %v539_v26 = vsel %vm534_vm5, %v4216_v24, 0  ;;  %v1318_v19 = vshrl.u32 %v1272_v41, 16  ;;  %v1316_v42 = vrot.slane %v1314_v37, 7 }
 0x103   :  { %v1312_v15 = vsel %vm1276_vm3, %v1300_v35, %v1311_v40  ;;  %v661_v1 = vsel %vm5197_vm2, %v659_v48, %v660_v46  ;;  %v663_v28 = vsel %vm5197_vm2, %v660_v46, %v4354_v44  ;;  %v1328_v35 = vrot.slane %v1326_v30, 7 }
 0x104   :  { %3519 = vmatmul.mubr.msk.bf16.vlgmr.msra.gmra.mrb[0].mxu1 %vm308_vm1, %v1312_v15  ;;  %3468 = vmatprep.mubr.msk.bf16.mxu0 %vm308_vm1, %v661_v1  ;;  %v4391_v3 = vrot.slane %v974_v55, 7  ;;  %v1329_v59 = vshll.u32 %v1273_v2, 16  ;;  %v1320_v20 = vrot.slane %v1318_v19, 7  ;;  %v1321_v29 = vshll.u32 %v1272_v41, 16  ;;  %v447_v15 = vld [vmem:[#allocation2 + $0x30] sm:$0xf8] }
 0x105   :  { %3531 = vmatpush3.bf16.msra.mxu1 %v1518_v45  ;;  %3469 = vmatmul.mubr.msk.bf16.gmra.mrb[24].mxu0 %vm308_vm1, %v663_v28  ;;  %v540_v12 = vsel %vm535_vm4, %v4294_v60, 0  ;;  %v566_v17 = vshrl.u32 %v539_v26, 16  ;;  %v1643_v37 = vrot.slane %v966_v43, 7  ;;  %v951_v55 = vsel %vm943_vm10, 65537, %v3837_v10 }
 0x106   :  { %3796 = vmatprep.subr.msk.bf16.mxu1 %vm5197_vm2, %v4380_v22  ;;  %v952_v2 = vsel %vm944_vm6, 65537, %v3837_v10  ;;  %v1323_v30 = vor.u32 %v1321_v29, %v1320_v20  ;;  %v1331_v40 = vor.u32 %v1329_v59, %v1328_v35  ;;  %v563_v46 = vor.u32 %v562_v49, %v559_v11 }
 0x107   :  { %v4413_v45 = vld [vmem:[#allocation2 + $0x50] sm:$0xf]  ;;  %v569_v41 = vshll.u32 %v539_v26, 16  ;;  %v575_v9 = vshrl.u32 %v540_v12, 16  ;;  %v578_v19 = vshll.u32 %v540_v12, 16  ;;  %v542_v29 = vsel %vm5195_vm9, %v447_v15, 0 }
 0x108   :  { %v4415_v43 = vld [vmem:[#allocation2 + $0x50] sm:$0xff]  ;;  %v4417_v1 = vld [vmem:[#allocation2 + $0x48] sm:$0xff]  ;;  %v666_v50 = vrot.slane %v4413_v45, 4  ;;  %v1324_v11 = vsel %vm1276_vm3, %v1316_v42, %v1323_v30  ;;  %v1646_v12 = vor.u32 %v4391_v3, %v5224_v47  ;;  %v4436_v48 = vcombine.low %v951_v55, %v952_v2 }
 0x109   :  { %v1275_v28 = vsel %vm1265_vm13, %v4415_v43, 0  ;;  %v1274_v10 = vsel %vm1264_vm11, %v4417_v1, 0  ;;  %v4428_v49 = vrot.slane %v4417_v1, 4  ;;  %3522 = vmatprep.mubr.msk.bf16.mxu1 %vm308_vm1, %v1324_v11  ;;  %v1332_v53 = vsel %vm1276_vm3, %v1320_v20, %v1331_v40 }
 0x10a   :  { %v1342_v26 = vshrl.u32 %v1275_v28, 16  ;;  %v1334_v59 = vshrl.u32 %v1274_v10, 16  ;;  %v1337_v15 = vshll.u32 %v1274_v10, 16  ;;  %v568_v55 = vrot.slane %v566_v17, 3 }
 0x10b   :  { %5223 = vst [vmem:[#allocation4_spill] sm:$0xff] %v4428_v49  ;;  %v4442_v42 = vsel %vm5197_vm2, %v4354_v44, %v4428_v49  ;;  %v667_v30 = vsel %vm5197_vm2, %v4428_v49, %v666_v50  ;;  %v571_v2 = vrot.slane %v569_v41, 4  ;;  %v564_v20 = vsel %vm547_vm8, %v555_v56, %v563_v46 }
 0x10c   :  { %5225 = vst [vmem:[#allocation5_spill] sm:$0xff] %v4442_v42  ;;  %v1344_v11 = vrot.slane %v1342_v26, 7  ;;  %3523 = vmatmul.mubr.msk.bf16.gmra.mrb[4].mxu1 %vm308_vm1, %v1332_v53  ;;  %3472 = vmatprep.mubr.msk.bf16.mxu0 %vm308_vm1, %v4442_v42  ;;  %v1336_v23 = vrot.slane %v1334_v59, 7  ;;  %v1345_v40 = vshll.u32 %v1275_v28, 16  ;;  %v577_v47 = vrot.slane %v575_v9, 3 }
 0x10d   :  { %3473 = vmatmul.mubr.msk.bf16.gmra.mrb[28].mxu0 %vm308_vm1, %v667_v30  ;;  %v580_v50 = vrot.slane %v578_v19, 4  ;;  %v541_v26 = vsel %vm5194_vm7, %v4283_v21, 0  ;;  %v5226_v17 = vshrl.u32 %v4155_v51, 16  ;;  %v992_v10 = vshrl.u32 %v4436_v48, 16 }
 0x10e   :  { %3478 = vmatprep.mubr.msk.bf16.mxu0 %vm308_vm1, %v564_v20  ;;  %v1339_v59 = vor.u32 %v1337_v15, %v1336_v23  ;;  %v1347_v53 = vor.u32 %v1345_v40, %v1344_v11  ;;  %v543_v56 = vsel %vm533_vm12, %v4351_v27, 0  ;;  %v5227_v39 = vshll.u32 %v4155_v51, 16 }
 0x10f   :  { %v985_v41 = vrot.slane %v5226_v17, 3  ;;  %v995_v28 = vshll.u32 %v4436_v48, 16  ;;  %v572_v9 = vor.u32 %v571_v2, %v568_v55  ;;  %v593_v19 = vshrl.u32 %v542_v29, 16 }
 0x110   :  { %v988_v63 = vrot.slane %v5227_v39, 4  ;;  %v1340_v21 = vsel %vm1276_vm3, %v1328_v35, %v1339_v59  ;;  %v596_v30 = vshll.u32 %v542_v29, 16  ;;  %v4469_v15 = vor.u32 %v580_v50, %v577_v47 }
 0x111   :  { %3526 = vmatprep.mubr.msk.bf16.mxu1 %vm308_vm1, %v1340_v21  ;;  %v584_v20 = vshrl.u32 %v541_v26, 16  ;;  %v587_v11 = vshll.u32 %v541_v26, 16  ;;  %v5228_v40 = vshll.u32 %v4013_v38, 16  ;;  %v601_v18 = vshrl.u32 %v543_v56, 16 }
 0x112   :  { %v604_v42 = vshll.u32 %v543_v56, 16  ;;  %vm1001_vm0 = vcmp.ne.s16.totalorder %v4224_v25, 0  ;;  %v4477_v48 = vsel %vm1276_vm3, %v1643_v37, %v1646_v12  ;;  %v994_v35 = vrot.slane %v992_v10, 3 }
 0x113   :  { %v4473_v17 = vor.u32 %v1643_v37, %v5228_v40  ;;  %v1348_v29 = vsel %vm1276_vm3, %v1336_v23, %v1347_v53  ;;  %v1130_v55 = vsel %vm5197_vm2, %v4261_v4, 0  ;;  %v997_v2 = vrot.slane %v995_v28, 4 }
 0x114   :  { %v5229_v47 = vshrl.u32 %v4155_v51, 16  ;;  %3527 = vmatmul.mubr.msk.bf16.gmra.mrb[8].mxu1 %vm308_vm1, %v1348_v29  ;;  %v573_v38 = vsel %vm547_vm8, %v563_v46, %v572_v9  ;;  %v595_v26 = vrot.slane %v593_v19, 3  ;;  %v598_v59 = vrot.slane %v596_v30, 4 }
 0x115   :  { %v4486_v56 = vrot.slane %v992_v10, 7  ;;  %3532 = vmatprep.mubr.msk.bf16.mxu1 %vm308_vm1, %v4229_v31  ;;  %3479 = vmatmul.mubr.msk.bf16.vlgmr.msra.gmra.mrb[16].mxu0 %vm308_vm1, %v573_v38  ;;  %v582_v4 = vsel %vm547_vm8, %v572_v9, %v4469_v15  ;;  %v586_v37 = vrot.slane %v584_v20, 3  ;;  %v589_v12 = vrot.slane %v587_v11, 4  ;;  %v1637_v10 = vld [vmem:[#allocation2 + $0x28] sm:$0x1] }
 0x116   :  { %v1648_v50 = vrot.slane %v5229_v47, 7  ;;  %v989_v23 = vor.u32 %v988_v63, %v985_v41  ;;  %3482 = vmatprep.mubr.msk.bf16.mxu0 %vm308_vm1, %v582_v4  ;;  %v603_v53 = vrot.slane %v601_v18, 3  ;;  %v606_v39 = vrot.slane %v604_v42, 4  ;;  %3495 = vmatpush3.bf16.msra.mxu0 %v1130_v55  ;;  %v1245_v20 = vld [vmem:[#allocation2] sm:$0x80] }
 0x117   :  { %v544_v46 = vsel %vm534_vm5, %v4341_v33, 0  ;;  %vm1658_vm6 = vcmp.ne.s16.totalorder %v4486_v56, 0  ;;  %v545_v21 = vsel %vm535_vm4, %v4417_v1, 0  ;;  %vm1654_vm11 = vcmp.ne.s16.totalorder %v4473_v17, 0  ;;  %3793 = vmatprep.subr.msk.bf16.mxu0 %vm5197_vm2, %v3961_v13  ;;  %v3256_v47 = vld [vmem:[%s5173_s4 + $0x18] sm:$0xf] }
 0x118   :  { %vm1655_vm13 = vcmp.ne.s16.totalorder %v4477_v48, 0  ;;  %v4503_v41 = vor.u32 %v997_v2, %v994_v35  ;;  %v5230_v18 = vshll.u32 %v4155_v51, 16  ;;  %v1768_v63 = vsel %vm5197_vm2, %v4380_v22, 0 }
 0x119   :  { %v599_v9 = vor.u32 %v598_v59, %v595_v26  ;;  %v1652_v19 = vor.u32 %v4486_v56, %v995_v28  ;;  %v1060_v30 = vshrl.u32 %v4306_v0, 16  ;;  %v590_v11 = vor.u32 %v589_v12, %v586_v37 }
 0x11a   :  { %v1649_v42 = vor.u32 %v1648_v50, %v5230_v18  ;;  %v610_v40 = vshrl.u32 %v544_v46, 16  ;;  %v613_v29 = vshll.u32 %v544_v46, 16  ;;  %v1663_v35 = vsel %vm1658_vm6, %v1637_v10, 0 }
 0x11b   :  { %v607_v51 = vor.u32 %v606_v39, %v603_v53  ;;  %v619_v55 = vshrl.u32 %v545_v21, 16  ;;  %v622_v2 = vshll.u32 %v545_v21, 16  ;;  %v1063_v13 = vshll.u32 %v4306_v0, 16 }
 0x11c   :  { %v4518_v22 = vsel %vm547_vm8, %v4194_v58, %v989_v23  ;;  %v4522_v28 = vsel %vm547_vm8, %v989_v23, %v4503_v41  ;;  %v4529_v38 = vsel %vm1276_vm3, %v4391_v3, %v1649_v42  ;;  %v1266_v26 = vsel %vm1261_vm14, %v1245_v20, 0  ;;  %3533 = vmatmul.mubr.msk.bf16.vlgmr.msra.gmra.mrb[12].mxu1 %vm308_vm1, %v4216_v24 }
 0x11d   :  { %v546_v58 = vsel %vm5194_vm7, %v4413_v45, 0  ;;  %v4539_v0 = vsel %vm1276_vm3, %v1648_v50, %v1652_v19  ;;  %v4541_v59 = vrot.slane %v1060_v30, 4  ;;  %v1701_v4 = vshll.u32 %v1663_v35, 16  ;;  %3549 = vmatpush3.bf16.msra.mxu1 %v1768_v63  ;;  %3536 = vmatprep.mubr.msk.bf16.mxu1 %vm308_vm1, %v4294_v60 }
 0x11e   :  { %v591_v57 = vsel %vm547_vm8, %v4469_v15, %v590_v11  ;;  %v612_v3 = vrot.slane %v610_v40, 3  ;;  %v615_v37 = vrot.slane %v613_v29, 4  ;;  %v1006_v45 = vsel %vm1001_vm0, %v4229_v31, 0  ;;  %3797 = vmatprep.subr.msk.bf16.mxu1 %vm5197_vm2, %v3256_v47  ;;  %v919_v29 = vld [vmem:[#allocation2 + $0x20] sm:$0x1f] }
 0x11f   :  { %3483 = vmatmul.mubr.msk.bf16.gmra.mrb[20].mxu0 %vm308_vm1, %v591_v57  ;;  %v608_v50 = vsel %vm547_vm8, %v599_v9, %v607_v51  ;;  %v621_v12 = vrot.slane %v619_v55, 3  ;;  %v624_v23 = vrot.slane %v622_v2, 4  ;;  %v4553_v53 = vrot.slane %v1063_v13, 5 }
 0x120   :  { %3486 = vmatprep.mubr.msk.bf16.mxu0 %vm308_vm1, %v608_v50  ;;  %v628_v39 = vshrl.u32 %v546_v58, 16  ;;  %vm1002_vm14 = vcmp.ne.s16.totalorder %v4518_v22, 0  ;;  %vm1004_vm15 = vcmp.ne.s16.totalorder %v4503_v41, 0  ;;  %v1278_v15 = vshrl.u32 %v1266_v26, 16  ;;  %v2611_v41 = vld [vmem:[%s5176_s7] sm:$0xf] }
 0x121   :  { %v631_v46 = vshll.u32 %v546_v58, 16  ;;  %v1024_v10 = vshrl.u32 %v1006_v45, 16  ;;  %vm1003_vm10 = vcmp.ne.s16.totalorder %v4522_v28, 0  ;;  %vm1656_vm7 = vcmp.ne.s16.totalorder %v4529_v38, 0  ;;  %v1642_v58 = vld [vmem:[#allocation2 + $0x58] sm:$0x1] }
 0x122   :  { %v616_v21 = vor.u32 %v615_v37, %v612_v3  ;;  %v1027_v18 = vshll.u32 %v1006_v45, 16  ;;  %v1659_v42 = vsel %vm1654_vm11, %v4229_v31, 0  ;;  %vm1657_vm9 = vcmp.ne.s16.totalorder %v4539_v0, 0 }
 0x123   :  { %v625_v63 = vor.u32 %v624_v23, %v621_v12  ;;  %v1660_v9 = vsel %vm1655_vm13, %v4216_v24, 0  ;;  %v4569_v30 = vrot.slane %v1701_v4, 1  ;;  %v630_v20 = vrot.slane %v628_v39, 3 }
 0x124   :  { %v1007_v11 = vsel %vm1002_vm14, %v4216_v24, 0  ;;  %v4575_v40 = vsel %vm5197_vm2, %v3256_v47, 0  ;;  %v4577_v35 = vrot.slane %v1278_v15, 7  ;;  %3537 = vmatmul.mubr.msk.bf16.gmra.mrb[0].mxu1 %vm308_vm1, %v4317_v36  ;;  %v633_v55 = vrot.slane %v631_v46, 4 }
 0x125   :  { %v1026_v2 = vrot.slane %v1024_v10, 4  ;;  %v1672_v13 = vshll.u32 %v1659_v42, 16  ;;  %v1008_v26 = vsel %vm1003_vm10, %v4294_v60, 0  ;;  %3540 = vmatprep.mubr.msk.bf16.mxu1 %vm308_vm1, %v4351_v27  ;;  %v617_v47 = vsel %vm547_vm8, %v607_v51, %v616_v21 }
 0x126   :  { %v1029_v4 = vrot.slane %v1027_v18, 5  ;;  %v1677_v57 = vshll.u32 %v1660_v9, 16  ;;  %v1661_v3 = vsel %vm1656_vm7, %v4294_v60, 0  ;;  %v626_v37 = vsel %vm547_vm8, %v616_v21, %v625_v63 }
 0x127   :  { %3487 = vmatmul.mubr.msk.bf16.gmra.mrb[24].mxu0 %vm308_vm1, %v617_v47  ;;  %v1033_v45 = vshrl.u32 %v1007_v11, 16  ;;  %v1036_v50 = vshll.u32 %v1007_v11, 16  ;;  %v1009_v12 = vsel %vm1004_vm15, %v919_v29, 0  ;;  %v1670_v23 = vshrl.u32 %v1659_v42, 16 }
 0x128   :  { %3490 = vmatprep.mubr.msk.bf16.mxu0 %vm308_vm1, %v626_v37  ;;  %v1042_v39 = vshrl.u32 %v1008_v26, 16  ;;  %v1045_v51 = vshll.u32 %v1008_v26, 16  ;;  %v4597_v15 = vsel %vm1658_vm6, %v1642_v58, 0  ;;  %v634_v46 = vor.u32 %v633_v55, %v630_v20 }
 0x129   :  { %v1674_v10 = vrot.slane %v1672_v13, 1  ;;  %v1681_v18 = vshrl.u32 %v1660_v9, 16  ;;  %v1685_v47 = vshll.u32 %v1661_v3, 16  ;;  %v1030_v19 = vor.u32 %v1029_v4, %v1026_v2 }
 0x12a   :  { %v1662_v21 = vsel %vm1657_vm9, %v4317_v36, 0  ;;  %v1051_v11 = vshrl.u32 %v1009_v12, 16  ;;  %v1054_v29 = vshll.u32 %v1009_v12, 16  ;;  %v1679_v49 = vrot.slane %v1677_v57, 1 }
 0x12b   :  { %v1035_v37 = vrot.slane %v1033_v45, 4  ;;  %v1038_v42 = vrot.slane %v1036_v50, 5  ;;  %vm5231_vm2 = vcmp.ne.s16.totalorder %v4212_v7, 0  ;;  %v1044_v26 = vrot.slane %v1042_v39, 4 }
 0x12c   :  { %v1267_v56 = vsel %vm5231_vm2, %v4229_v31, 0  ;;  %v1047_v58 = vrot.slane %v1045_v51, 5  ;;  %v1011_v9 = vsel %vm1001_vm0, %v4351_v27, 0  ;;  %3541 = vmatmul.mubr.msk.bf16.gmra.mrb[4].mxu1 %vm308_vm1, %v4341_v33  ;;  %v635_v55 = vsel %vm547_vm8, %v625_v63, %v634_v46 }
 0x12d   :  { %v1282_v20 = vshrl.u32 %v1267_v56, 16  ;;  %v1675_v2 = vor.u32 %v1674_v10, %v1670_v23  ;;  %v1687_v13 = vrot.slane %v1685_v47, 1  ;;  %v1693_v4 = vshll.u32 %v1662_v21, 16  ;;  %3544 = vmatprep.mubr.msk.bf16.mxu1 %vm308_vm1, %v4417_v1 }
 0x12e   :  { %v1053_v7 = vrot.slane %v1051_v11, 4  ;;  %v1056_v31 = vrot.slane %v1054_v29, 5  ;;  %v1285_v45 = vshll.u32 %v1267_v56, 16  ;;  %v5232_v50 = vor.u32 %v4325_v8, %v4241_v62 }
 0x12f   :  { %v1284_v57 = vrot.slane %v1282_v20, 7  ;;  %3491 = vmatmul.mubr.msk.bf16.gmra.mrb[28].mxu0 %vm308_vm1, %v635_v55  ;;  %vm5233_vm2 = vsmask.f32 3328  ;;  %v1683_v39 = vor.u32 %v1681_v18, %v1679_v49  ;;  %v1068_v51 = vshrl.u32 %v1011_v9, 16 }
 0x130   :  { %v1031_v12 = vsel %vm5233_vm2, %v5232_v50, %v1030_v19  ;;  %v1071_v63 = vshll.u32 %v1011_v9, 16  ;;  %v1039_v23 = vor.u32 %v1038_v42, %v1035_v37  ;;  %v1048_v46 = vor.u32 %v1047_v58, %v1044_v26 }
 0x131   :  { %3496 = vmatprep.mubr.msk.bf16.mxu0 %vm308_vm1, %v1031_v12  ;;  %v1689_v10 = vshrl.u32 %v1661_v3, 16  ;;  %v1287_v47 = vor.u32 %v1285_v45, %v1284_v57  ;;  %v1695_v11 = vrot.slane %v1693_v4, 1  ;;  %v4622_v29 = vsel %vm1654_vm11, %v4351_v27, 0  ;;  %vm5235_vm11 = vmmov %vm5233_vm2 }
 0x132   :  { %v4627_v62 = vsel %vm1655_vm13, %v4341_v33, 0  ;;  %v4631_v8 = vsel %vm1276_vm3, %v1284_v57, %v4272_v32  ;;  %vm5234_vm6 = vsmask.f32 7424  ;;  %v1057_v3 = vor.u32 %v1056_v31, %v1053_v7  ;;  %vm5236_vm13 = vmmov %vm5233_vm2 }
 0x133   :  { %v1680_v18 = vsel %vm5234_vm6, %v1675_v2, %v1679_v49  ;;  %v1691_v37 = vor.u32 %v1689_v10, %v1687_v13  ;;  %v4636_v42 = vsel %vm1276_vm3, %v4577_v35, %v1287_v47  ;;  %v1070_v17 = vrot.slane %v1068_v51, 4  ;;  %vm5237_vm3 = vmmov %vm5234_vm6  ;;  %v920_v51 = vld [vmem:[#allocation2 + $0x50] sm:$0x1f] }
 0x134   :  { %v1073_v27 = vrot.slane %v1071_v63, 5  ;;  %v1697_v56 = vshrl.u32 %v1662_v21, 16  ;;  %v1893_v48 = vsel %vm533_vm12, %v4341_v33, 0  ;;  %v1040_v26 = vsel %vm5235_vm11, %v1030_v19, %v1039_v23  ;;  %3545 = vmatmul.mubr.msk.bf16.gmra.mrb[8].mxu1 %vm308_vm1, %v4415_v43  ;;  %vm5238_vm2 = vmmov %vm5237_vm3 }
 0x135   :  { %v1049_v32 = vsel %vm5236_vm13, %v1039_v23, %v1048_v46  ;;  %v1708_v58 = vshll.u32 %v4622_v29, 16  ;;  %v1713_v49 = vshll.u32 %v4627_v62, 16  ;;  %v1688_v35 = vsel %vm5237_vm3, %v1683_v39, %v1687_v13  ;;  %3550 = vmatprep.mubr.msk.bf16.mxu1 %vm308_vm1, %v1680_v18  ;;  %vm5239_vm6 = vmmov %vm5235_vm11 }
 0x136   :  { %v1699_v9 = vor.u32 %v1697_v56, %v1695_v11  ;;  %v1012_v21 = vsel %vm1002_vm14, %v4341_v33, 0  ;;  %v1950_v20 = vshrl.u32 %v1893_v48, 16  ;;  %v1696_v19 = vsel %vm5238_vm2, %v1691_v37, %v1695_v11  ;;  %vm5244_vm13 = vmmov %vm5238_vm2 }
 0x137   :  { %v1058_v55 = vsel %vm5239_vm6, %v1048_v46, %v1057_v3  ;;  %v1706_v2 = vshrl.u32 %v4622_v29, 16  ;;  %v1953_v4 = vshll.u32 %v1893_v48, 16  ;;  %3497 = vmatmul.mubr.msk.bf16.vlgmr.msra.gmra.mrb[16].mxu0 %vm308_vm1, %v1040_v26  ;;  %v4656_v7 = vor.u32 %v1073_v27, %v1070_v17 }
 0x138   :  { %v1013_v13 = vsel %vm1003_vm10, %v4417_v1, 0  ;;  %v1666_v31 = vsel %vm1656_vm7, %v4417_v1, 0  ;;  %v1894_v57 = vsel %vm534_vm5, %v4417_v1, 0  ;;  %3500 = vmatprep.mubr.msk.bf16.mxu0 %vm308_vm1, %v1049_v32  ;;  %v1710_v45 = vrot.slane %v1708_v58, 1  ;;  %3513 = vmatpush3.bf16.msra.mxu0 %v3967_v14  ;;  %vm5241_vm7 = vmmov %vm5239_vm6  ;;  %v4683_v32 = vld [vmem:[%s5173_s4 + $0x1c] sm:$0xf] }
 0x139   :  { %v1715_v50 = vrot.slane %v1713_v49, 1  ;;  %v1077_v12 = vshrl.u32 %v1012_v21, 16  ;;  %v1959_v39 = vshrl.u32 %v1894_v57, 16  ;;  %v1952_v63 = vrot.slane %v1950_v20, 3 }
 0x13a   :  { %v1955_v23 = vrot.slane %v1953_v4, 4  ;;  %v1962_v46 = vshll.u32 %v1894_v57, 16  ;;  %v1895_v38 = vsel %vm535_vm4, %v4415_v43, 0  ;;  %v1080_v10 = vshll.u32 %v1012_v21, 16 }
 0x13b   :  { %v1086_v47 = vshrl.u32 %v1013_v13, 16  ;;  %v1089_v11 = vshll.u32 %v1013_v13, 16  ;;  %v1961_v29 = vrot.slane %v1959_v39, 3  ;;  %v1717_v18 = vshrl.u32 %v4627_v62, 16 }
 0x13c   :  { %v1964_v37 = vrot.slane %v1962_v46, 4  ;;  %v1968_v3 = vshrl.u32 %v1895_v38, 16  ;;  %v1971_v17 = vshll.u32 %v1895_v38, 16  ;;  %v5240_v14 = vor.u32 %v4553_v53, %v4541_v59  ;;  %3551 = vmatmul.mubr.msk.bf16.vlgmr.msra.gmra.mrb[12].mxu1 %vm308_vm1, %v1688_v35 }
 0x13d   :  { %v1079_v56 = vrot.slane %v1077_v12, 4  ;;  %v1721_v48 = vshll.u32 %v1666_v31, 16  ;;  %v1014_v26 = vsel %vm1004_vm15, %v920_v51, 0  ;;  %v4686_v62 = vor.u32 %v1955_v23, %v1952_v63  ;;  %3567 = vmatpush3.bf16.msra.mxu1 %v4575_v40  ;;  %3554 = vmatprep.mubr.msk.bf16.mxu1 %vm308_vm1, %v1696_v19  ;;  %v1883_v51 = vld [vmem:[#allocation2 + $0x8] sm:$0xf8] }
 0x13e   :  { %v1075_v27 = vsel %vm5241_vm7, %v5240_v14, %v4656_v7  ;;  %v1965_v58 = vor.u32 %v1964_v37, %v1961_v29  ;;  %v1970_v49 = vrot.slane %v1968_v3, 3  ;;  %v1973_v21 = vrot.slane %v1971_v17, 4 }
 0x13f   :  { %v1082_v59 = vrot.slane %v1080_v10, 5  ;;  %v1088_v53 = vrot.slane %v1086_v47, 4  ;;  %v1091_v20 = vrot.slane %v1089_v11, 5  ;;  %v4693_v4 = vsel %vm1657_vm9, %v4415_v43, 0  ;;  %3501 = vmatmul.mubr.msk.bf16.gmra.mrb[20].mxu0 %vm308_vm1, %v1058_v55  ;;  %vm5243_vm9 = vmmov %vm5238_vm2 }
 0x140   :  { %v1095_v35 = vshrl.u32 %v1014_v26, 16  ;;  %v1098_v13 = vshll.u32 %v1014_v26, 16  ;;  %vm5242_vm11 = vcmask 1043456   ;;  %v4700_v40 = vsel %vm547_vm8, %v4686_v62, %v1965_v58  ;;  %3504 = vmatprep.mubr.msk.bf16.mxu0 %vm308_vm1, %v1075_v27  ;;  %vm5246_vm2 = vmmov %vm5239_vm6 }
 0x141   :  { %3798 = vmatprep.subr.msk.bf16.mxu1 %vm5242_vm11, %v4683_v32  ;;  %v4702_v19 = vor.u32 %v1973_v21, %v1970_v49  ;;  %v1711_v57 = vor.u32 %v1710_v45, %v1706_v2  ;;  %v1723_v12 = vrot.slane %v1721_v48, 1  ;;  %v1704_v0 = vsel %vm5243_vm9, %v1699_v9, %v4569_v30  ;;  %vm5247_vm6 = vmmov %vm5246_vm2 }
 0x142   :  { %v1719_v39 = vor.u32 %v1717_v18, %v1715_v50  ;;  %v1737_v55 = vshll.u32 %v4597_v15, 16  ;;  %v1083_v23 = vor.u32 %v1082_v59, %v1079_v56  ;;  %v1092_v46 = vor.u32 %v1091_v20, %v1088_v53  ;;  %vm5249_vm7 = vmmov %vm5243_vm9 }
 0x143   :  { %v4710_v63 = vsel %vm547_vm8, %v1965_v58, %v4702_v19  ;;  %v1725_v38 = vshrl.u32 %v1666_v31, 16  ;;  %v1729_v10 = vshll.u32 %v4693_v4, 16  ;;  %v1097_v47 = vrot.slane %v1095_v35, 4  ;;  %vm5251_vm11 = vmmov %vm5246_vm2 }
 0x144   :  { %v1100_v11 = vrot.slane %v1098_v13, 5  ;;  %v2303_v2 = vsel %vm1002_vm14, %v4294_v60, 0  ;;  %v2304_v30 = vsel %vm1003_vm10, %v4317_v36, 0  ;;  %v1716_v15 = vsel %vm5244_vm13, %v1711_v57, %v1715_v50  ;;  %3555 = vmatmul.mubr.msk.bf16.gmra.mrb[0].mxu1 %vm308_vm1, %v1704_v0 }
 0x145   :  { %v1727_v9 = vor.u32 %v1725_v38, %v1723_v12  ;;  %vm5245_vm3 = vcmp.ne.s16.totalorder %v4175_v34, 0  ;;  %v2329_v29 = vshrl.u32 %v2303_v2, 16  ;;  %v1888_v31 = vsel %vm533_vm12, %v4216_v24, 0  ;;  %3558 = vmatprep.mubr.msk.bf16.mxu1 %vm308_vm1, %v1716_v15  ;;  %vm5248_vm12 = vmmov %vm5243_vm9  ;;  %v3274_v34 = vld [vmem:[%s5173_s4 + $0x20] sm:$0xf] }
 0x146   :  { %v1887_v45 = vsel %vm5245_vm3, %v1883_v51, 0  ;;  %v2332_v18 = vshll.u32 %v2303_v2, 16  ;;  %v2338_v37 = vshrl.u32 %v2304_v30, 16  ;;  %v2341_v3 = vshll.u32 %v2304_v30, 16  ;;  %vm5255_vm9 = vmmov %vm5245_vm3 }
 0x147   :  { %v1084_v17 = vsel %vm5246_vm2, %v4656_v7, %v1083_v23  ;;  %v1093_v50 = vsel %vm5247_vm6, %v1083_v23, %v1092_v46  ;;  %v1731_v14 = vrot.slane %v1729_v10, 1  ;;  %v2331_v27 = vrot.slane %v2329_v29, 4 }
 0x148   :  { %3505 = vmatmul.mubr.msk.bf16.gmra.mrb[24].mxu0 %vm308_vm1, %v1084_v17  ;;  %v1101_v56 = vor.u32 %v1100_v11, %v1097_v47  ;;  %v2334_v48 = vrot.slane %v2332_v18, 5  ;;  %v2340_v26 = vrot.slane %v2338_v37, 4  ;;  %v2343_v58 = vrot.slane %v2341_v3, 5  ;;  %v4766_v3 = vld [vmem:[#allocation2 + $0x28] sm:$0xf] }
 0x149   :  { %3508 = vmatprep.mubr.msk.bf16.mxu0 %vm308_vm1, %v1093_v50  ;;  %v1898_v52 = vshrl.u32 %v1887_v45, 16  ;;  %v1901_v24 = vshll.u32 %v1887_v45, 16  ;;  %v1906_v49 = vshrl.u32 %v1888_v31, 16  ;;  %v2308_v21 = vsel %vm1002_vm14, %v4417_v1, 0  ;;  %vm5250_vm14 = vmmov %vm5246_vm2 }
 0x14a   :  { %v1909_v7 = vshll.u32 %v1888_v31, 16  ;;  %v4735_v59 = vor.u32 %v2334_v48, %v2331_v27  ;;  %v4737_v53 = vor.u32 %v2343_v58, %v2340_v26  ;;  %v2373_v20 = vshrl.u32 %v2308_v21, 16 }
 0x14b   :  { %v1724_v35 = vsel %vm5248_vm12, %v1719_v39, %v1723_v12  ;;  %v1732_v13 = vsel %vm5249_vm7, %v1727_v9, %v1731_v14  ;;  %v2376_v57 = vshll.u32 %v2308_v21, 16  ;;  %v2309_v0 = vsel %vm1003_vm10, %v4415_v43, 0 }
 0x14c   :  { %v1733_v51 = vshrl.u32 %v4693_v4, 16  ;;  %v1889_v1 = vsel %vm534_vm5, %v4294_v60, 0  ;;  %v4751_v22 = vsel %vm5250_vm14, %v4735_v59, %v4737_v53  ;;  %v2375_v23 = vrot.slane %v2373_v20, 4  ;;  %3559 = vmatmul.mubr.msk.bf16.gmra.mrb[4].mxu1 %vm308_vm1, %v1724_v35  ;;  %vm5253_vm5 = vmmov %vm5249_vm7 }
 0x14d   :  { %v1102_v12 = vsel %vm5251_vm11, %v1092_v46, %v1101_v56  ;;  %v2378_v39 = vrot.slane %v2376_v57, 5  ;;  %v2382_v38 = vshrl.u32 %v2309_v0, 16  ;;  %v2385_v10 = vshll.u32 %v2309_v0, 16  ;;  %3562 = vmatprep.mubr.msk.bf16.mxu1 %vm308_vm1, %v1732_v13 }
 0x14e   :  { %v1900_v28 = vrot.slane %v1898_v52, 3  ;;  %v1903_v47 = vrot.slane %v1901_v24, 4  ;;  %v1908_v4 = vrot.slane %v1906_v49, 3  ;;  %v1911_v11 = vrot.slane %v1909_v7, 4 }
 0x14f   :  { %v1890_v54 = vsel %vm535_vm4, %v4317_v36, 0  ;;  %v4759_v60 = vor.u32 %v2378_v39, %v2375_v23  ;;  %v2384_v2 = vrot.slane %v2382_v38, 4  ;;  %v2387_v30 = vrot.slane %v2385_v10, 5  ;;  %vm5252_vm4 = vmmov %vm5246_vm2 }
 0x150   :  { %3509 = vmatmul.mubr.msk.bf16.gmra.mrb[28].mxu0 %vm308_vm1, %v1102_v12  ;;  %v1739_v46 = vrot.slane %v1737_v55, 1  ;;  %v1735_v15 = vor.u32 %v1733_v51, %v1731_v14  ;;  %v1915_v9 = vshrl.u32 %v1889_v1, 16  ;;  %v1918_v45 = vshll.u32 %v1889_v1, 16  ;;  %v1885_v55 = vld [vmem:[#allocation2 + $0x38] sm:$0xf8] }
 0x151   :  { %3514 = vmatprep.mubr.msk.bf16.mxu0 %vm308_vm1, %v4636_v42  ;;  %v4764_v29 = vor.u32 %v2387_v30, %v2384_v2  ;;  %v1904_v31 = vor.u32 %v1903_v47, %v1900_v28  ;;  %v1912_v18 = vor.u32 %v1911_v11, %v1908_v4  ;;  %v1924_v37 = vshrl.u32 %v1890_v54, 16  ;;  %v1886_v12 = vld [vmem:[#allocation2 + $0x58] sm:$0xf] }
 0x152   :  { %v1927_v16 = vshll.u32 %v1890_v54, 16  ;;  %v1740_v50 = vsel %vm5253_vm5, %v1735_v15, %v1739_v46  ;;  %v1917_v42 = vrot.slane %v1915_v9, 3  ;;  %v1920_v14 = vrot.slane %v1918_v45, 4  ;;  %v2127_v54 = vld [vmem:[#allocation2 + $0x8] sm:$0xf0]  ;;  %v3828_v46 = vld [vmem:[#allocation2 + $0x10] sm:$0xff] }
 0x153   :  { %v4771_v17 = vsel %vm5252_vm4, %v4759_v60, %v4764_v29  ;;  %v1913_v27 = vsel %vm547_vm8, %v1904_v31, %v1912_v18  ;;  %v1926_v56 = vrot.slane %v1924_v37, 3  ;;  %vm5254_vm10 = vcmp.ne.s16.totalorder %v4161_v5, 0 }
 0x154   :  { %3563 = vmatmul.mubr.msk.bf16.gmra.mrb[8].mxu1 %vm308_vm1, %v1740_v50  ;;  %v1929_v48 = vrot.slane %v1927_v16, 4  ;;  %v1891_v26 = vsel %vm5254_vm10, %v4766_v3, 0  ;;  %v1892_v58 = vsel %vm5255_vm9, %v1885_v55, 0  ;;  %v1921_v52 = vor.u32 %v1920_v14, %v1917_v42  ;;  %vm5258_vm2 = vmmov %vm5254_vm10 }
 0x155   :  { %3568 = vmatprep.mubr.msk.bf16.mxu1 %vm308_vm1, %v1913_v27  ;;  %v1933_v24 = vshrl.u32 %v1891_v26, 16  ;;  %v1936_v49 = vshll.u32 %v1891_v26, 16  ;;  %v1942_v7 = vshrl.u32 %v1892_v58, 16  ;;  %v1945_v20 = vshll.u32 %v1892_v58, 16  ;;  %v5266_v27 = vld [vmem:[#allocation4_spill] sm:$0xff] }
 0x156   :  { %v1930_v21 = vor.u32 %v1929_v48, %v1926_v56  ;;  %vm5256_vm13 = vcmask 1043456   ;;  %v1922_v13 = vsel %vm547_vm8, %v1912_v18, %v1921_v52  ;;  %v1896_v10 = vsel %vm5258_vm2, %v1886_v12, 0  ;;  %v5268_v48 = vld [vmem:[#allocation5_spill] sm:$0xff] }
 0x157   :  { %v2184_v35 = vsel %vm5256_vm13, %v4683_v32, 0  ;;  %v1935_v57 = vrot.slane %v1933_v24, 3  ;;  %v1938_v0 = vrot.slane %v1936_v49, 4  ;;  %v1944_v51 = vrot.slane %v1942_v7, 3  ;;  %vm5257_vm3 = vmmov %vm5256_vm13 }
 0x158   :  { %3515 = vmatmul.mubr.msk.bf16.vlgmr.msra.gmra.mrb[16].mxu0 %vm308_vm1, %v4631_v8  ;;  %v1931_v8 = vsel %vm547_vm8, %v1921_v52, %v1930_v21  ;;  %v1947_v1 = vrot.slane %v1945_v20, 4  ;;  %v1977_v28 = vshrl.u32 %v1896_v10, 16  ;;  %v1980_v47 = vshll.u32 %v1896_v10, 16  ;;  %vm5259_vm6 = vmmov %vm5257_vm3 }
 0x159   :  { %v1939_v32 = vor.u32 %v1938_v0, %v1935_v57  ;;  %v2139_v30 = vrot.slane %v2127_v54, 4  ;;  %v2144_v9 = vrot.slane %v4317_v36, 4  ;;  %vm5260_vm12 = vmmov %vm5257_vm3  ;;  %v2146_v31 = vrot.slane %v4766_v3, 4 }
 0x15a   :  { %v1948_v23 = vor.u32 %v1947_v1, %v1944_v51  ;;  %v1979_v4 = vrot.slane %v1977_v28, 3  ;;  %v1982_v11 = vrot.slane %v1980_v47, 4  ;;  %vm5261_vm7 = vmmov %vm5257_vm3  ;;  %vm5265_vm4 = vcmp.ne.s16.totalorder %v4088_v61, 0 }
 0x15b   :  { %v1940_v39 = vsel %vm547_vm8, %v1930_v21, %v1939_v32  ;;  %vm5262_vm14 = vmmov %vm5257_vm3  ;;  %v2301_v16 = vsel %vm5265_vm4, %v2127_v54, 0  ;;  %v2153_v55 = vrot.slane %v4415_v43, 4  ;;  %v2155_v24 = vrot.slane %v1886_v12, 4  ;;  %v2299_v43 = vld [vmem:[#allocation2 + $0x28] sm:$0x1f] }
 0x15c   :  { %3569 = vmatmul.mubr.msk.bf16.vlgmr.msra.gmra.mrb[12].mxu1 %vm308_vm1, %v1922_v13  ;;  %v1957_v38 = vsel %vm547_vm8, %v1948_v23, %v4686_v62  ;;  %v1983_v2 = vor.u32 %v1982_v11, %v1979_v4  ;;  %v2140_v62 = vrot.slane %v3828_v46, 4  ;;  %v2145_v45 = vsel %vm5262_vm14, %v4312_v6, %v2144_v9  ;;  %vm5264_vm11 = vmmov %vm5257_vm3  ;;  %v2300_v4 = vld [vmem:[#allocation2 + $0x58] sm:$0x1f] }
 0x15d   :  { %3585 = vmatpush3.bf16.msra.mxu1 %v2184_v35  ;;  %3572 = vmatprep.mubr.msk.bf16.mxu1 %vm308_vm1, %v1931_v8  ;;  %v2312_v50 = vshrl.u32 %v2301_v16, 16  ;;  %v2315_v3 = vshll.u32 %v2301_v16, 16  ;;  %vm5267_vm5 = vmmov %vm5257_vm3  ;;  %vm5270_vm9 = vsmask.f32 3328  ;;  %v2305_v35 = vsel %vm1004_vm15, %v2299_v43, 0 }
 0x15e   :  { %3799 = vmatprep.subr.msk.bf16.mxu1 %vm5257_vm3, %v3274_v34  ;;  %v1984_v5 = vsel %vm547_vm8, %v4702_v19, %v1983_v2  ;;  %v2141_v15 = vsel %vm5259_vm6, %v2139_v30, %v2140_v62  ;;  %v2128_v19 = vld [vmem:[#allocation2 + $0x38] sm:$0xf0]  ;;  %vm5263_vm8 = vmmov %vm5257_vm3  ;;  %v2154_v56 = vsel %vm5267_vm5, %v5266_v27, %v2153_v55  ;;  %v2307_v57 = vsel %vm1001_vm0, %v4341_v33, 0 }
 0x15f   :  { %v2148_v18 = vrot.slane %v2128_v19, 4  ;;  %v2147_v37 = vsel %vm5263_vm8, %v2144_v9, %v2146_v31  ;;  %v2317_v26 = vrot.slane %v2315_v3, 5  ;;  %vm5269_vm10 = vmmov %vm5257_vm3  ;;  %v2347_v0 = vshrl.u32 %v2305_v35, 16 }
 0x160   :  { %v2156_v7 = vsel %vm5269_vm10, %v2153_v55, %v2155_v24  ;;  %vm5271_vm13 = vmmov %vm5265_vm4  ;;  %v2364_v1 = vshrl.u32 %v2307_v57, 16  ;;  %v2367_v32 = vshll.u32 %v2307_v57, 16  ;;  %v2310_v54 = vsel %vm1004_vm15, %v2300_v4, 0 }
 0x161   :  { %v2150_v36 = vsel %vm5264_vm11, %v2148_v18, %v4354_v44  ;;  %v2314_v44 = vrot.slane %v2312_v50, 4  ;;  %v2306_v13 = vsel %vm5271_vm13, %v2128_v19, 0  ;;  %vm5272_vm3 = vmmov %vm5270_vm9  ;;  %v2349_v12 = vrot.slane %v2347_v0, 4 }
 0x162   :  { %v2356_v8 = vshrl.u32 %v2306_v13, 16  ;;  %v2359_v51 = vshll.u32 %v2306_v13, 16  ;;  %v2366_v10 = vrot.slane %v2364_v1, 4  ;;  %v2369_v28 = vrot.slane %v2367_v32, 5  ;;  %vm5277_vm15 = vmmov %vm5267_vm5 }
 0x163   :  { %v2318_v49 = vor.u32 %v2317_v26, %v2314_v44  ;;  %v2391_v2 = vshrl.u32 %v2310_v54, 16  ;;  %v2394_v30 = vshll.u32 %v2310_v54, 16  ;;  %3800 = vmatprep.subr.msk.bf16.mxu0 %vm5277_vm15, %v2611_v41  ;;  %vm5279_vm14 = vcmask 261120  }
 0x164   :  { %3573 = vmatmul.mubr.msk.bf16.gmra.mrb[0].mxu1 %vm308_vm1, %v1940_v39  ;;  %v2358_v61 = vrot.slane %v2356_v8, 4  ;;  %v2370_v47 = vor.u32 %v2369_v28, %v2366_v10  ;;  %vm5280_vm8 = vmmov %vm5279_vm14 }
 0x165   :  { %3576 = vmatprep.mubr.msk.bf16.mxu1 %vm308_vm1, %v1957_v38  ;;  %v2361_v38 = vrot.slane %v2359_v51, 5  ;;  %vm5281_vm11 = vmmov %vm5280_vm8 }
 0x166   :  { %vm5282_vm4 = vmmov %vm5280_vm8 }
 0x167   :  { %v2362_v33 = vor.u32 %v2361_v38, %v2358_v61  ;;  %vm5284_vm10 = vmmov %vm5282_vm4 }
 0x168   :  { %vm5286_vm13 = vmmov %vm5282_vm4 }
 0x16c   :  { %3577 = vmatmul.mubr.msk.bf16.gmra.mrb[4].mxu1 %vm308_vm1, %v4700_v40  ;;  %v2426_v40 = vsel %vm5260_vm12, %v3274_v34, 0  ;;  %v2350_v34 = vshll.u32 %v2305_v35, 16 }
 0x16d   :  { %3580 = vmatprep.mubr.msk.bf16.mxu1 %vm308_vm1, %v4710_v63  ;;  %v2143_v63 = vsel %vm5261_vm7, %v2140_v62, %v4312_v6  ;;  %v2302_v6 = vsel %vm1001_vm0, %v3828_v46, 0  ;;  %vm5273_vm0 = vmmov %vm5272_vm3  ;;  %v2393_v46 = vrot.slane %v2391_v2, 4  ;;  %v2396_v62 = vrot.slane %v2394_v30, 5 }
 0x16e   :  { %v2320_v42 = vshrl.u32 %v2302_v6, 16  ;;  %v2323_v14 = vshll.u32 %v2302_v6, 16  ;;  %v2352_v39 = vrot.slane %v2350_v34, 5  ;;  %vm5274_vm2 = vmmov %vm5273_vm0 }
 0x16f   :  { %vm5275_vm6 = vmmov %vm5273_vm0 }
 0x170   :  { %v2322_v58 = vrot.slane %v2320_v42, 4  ;;  %v2325_v52 = vrot.slane %v2323_v14, 5  ;;  %v2353_v25 = vor.u32 %v2352_v39, %v2349_v12  ;;  %vm5276_vm12 = vmmov %vm5273_vm0  ;;  %v4885_v42 = vld [vmem:[%s5177_s5] ss:$0 sm:$0xff] }
 0x171   :  { %vm5278_vm7 = vmmov %vm5267_vm5 }
 0x172   :  { %v2326_v21 = vor.u32 %v2325_v52, %v2322_v58  ;;  %v2354_v11 = vsel %vm5273_vm0, %v4737_v53, %v2353_v25  ;;  %v2397_v53 = vor.u32 %v2396_v62, %v2393_v46  ;;  %vm5283_vm5 = vmmov %vm5282_vm4 }
 0x174   :  { %3581 = vmatmul.mubr.msk.bf16.gmra.mrb[8].mxu1 %vm308_vm1, %v1984_v5  ;;  %v2327_v20 = vsel %vm5270_vm9, %v2318_v49, %v2326_v21  ;;  %v2336_v23 = vsel %vm5272_vm3, %v2326_v21, %v4735_v59  ;;  %v2371_v59 = vsel %vm5274_vm2, %v2362_v33, %v2370_v47  ;;  %v2398_v5 = vsel %vm5276_vm12, %v4764_v29, %v2397_v53  ;;  %vm5285_vm9 = vmmov %vm5282_vm4 }
 0x175   :  { %3586 = vmatprep.mubr.msk.bf16.mxu1 %vm308_vm1, %v2141_v15  ;;  %vm5287_vm3 = vmmov %vm5282_vm4 }
 0x176   :  { %vm5288_vm0 = vmmov %vm5287_vm3 }
 0x177   :  { %vm5289_vm2 = vmmov %vm5288_vm0 }
 0x178   :  { %vm5291_vm12 = vmmov %vm5288_vm0 }
 0x179   :  { %vm5292_vm15 = vmmov %vm5288_vm0 }
 0x17c   :  { %3587 = vmatmul.mubr.msk.bf16.vlgmr.msra.gmra.mrb[12].mxu1 %vm308_vm1, %v2143_v63 }
 0x17d   :  { %3603 = vmatpush3.bf16.msra.mxu1 %v2426_v40  ;;  %3590 = vmatprep.mubr.msk.bf16.mxu1 %vm308_vm1, %v2145_v45 }
 0x184   :  { %3591 = vmatmul.mubr.msk.bf16.gmra.mrb[0].mxu1 %vm308_vm1, %v2147_v37 }
 0x185   :  { %3594 = vmatprep.mubr.msk.bf16.mxu1 %vm308_vm1, %v2150_v36 }
 0x18c   :  { %3595 = vmatmul.mubr.msk.bf16.gmra.mrb[4].mxu1 %vm308_vm1, %v5268_v48 }
 0x18d   :  { %3598 = vmatprep.mubr.msk.bf16.mxu1 %vm308_vm1, %v2154_v56  ;;  %v4890_v56 = vld [vmem:[%s5178_s6] ss:$0 sm:$0xff] }
 0x194   :  { %3599 = vmatmul.mubr.msk.bf16.gmra.mrb[8].mxu1 %vm308_vm1, %v2156_v7 }
 0x195   :  { %3604 = vmatprep.mubr.msk.bf16.mxu1 %vm308_vm1, %v2327_v20 }
 0x19c   :  { %3605 = vmatmul.mubr.msk.bf16.vlgmr.msra.gmra.mrb[12].mxu1 %vm308_vm1, %v2336_v23 }
 0x19d   :  { %3608 = vmatprep.mubr.msk.bf16.mxu1 %vm308_vm1, %v4751_v22  ;;  %v2380_v22 = vsel %vm5275_vm6, %v2370_v47, %v4759_v60  ;;  %v2637_v60 = vsel %vm5278_vm7, %v2611_v41, 0  ;;  %vm5290_vm6 = vmmov %vm5288_vm0 }
 0x19e   :  { %3621 = vmatpush3.bf16.msra.mxu0 %v2637_v60  ;;  %vm5293_vm7 = vmmov %vm5288_vm0 }
 0x1a4   :  { %3609 = vmatmul.mubr.msk.bf16.gmra.mrb[0].mxu1 %vm308_vm1, %v2354_v11 }
 0x1a5   :  { %3612 = vmatprep.mubr.msk.bf16.mxu1 %vm308_vm1, %v2371_v59 }
 0x1ac   :  { %3613 = vmatmul.mubr.msk.bf16.gmra.mrb[4].mxu1 %vm308_vm1, %v2380_v22 }
 0x1ad   :  { %3616 = vmatprep.mubr.msk.bf16.mxu1 %vm308_vm1, %v4771_v17 }
 0x1b4   :  { %3617 = vmatmul.mubr.msk.bf16.gmra.mrb[8].mxu1 %vm308_vm1, %v2398_v5 }
 0x212   :  { %v3502_v15 = vpop.f32.mrb[20].mxu0 }
 0x213   :  { %v1182_v9 = vpop.f32.mrb[21].mxu0 }
 0x214   :  { %v3503_v40 = vpop.f32.mrb[22].mxu0 }
 0x215   :  { %v1185_v63 = vpop.f32.mrb[23].mxu0 }
 0x21b   :  { %v3506_v17 = vpop.f32.mrb[24].mxu0 }
 0x21c   :  { %v1198_v45 = vpop.f32.mrb[25].mxu0 }
 0x21d   :  { %v4870_v19 = vpop.f32.mrb[26].mxu0 }
 0x21e   :  { %v4872_v29 = vpop.f32.mrb[27].mxu0 }
 0x223   :  { %v4874_v31 = vpop.f32.mrb[28].mxu0 }
 0x224   :  { %v4876_v18 = vpop.f32.mrb[29].mxu0 }
 0x225   :  { %v4878_v37 = vpop.f32.mrb[30].mxu0 }
 0x226   :  { %v4880_v36 = vpop.f32.mrb[31].mxu0 }
 0x22b   :  { %v3516_v16 = vpop.f32.mrb[16].mxu0 }
 0x22c   :  { %v1412_v6 = vpop.f32.mrb[17].mxu0 }
 0x22d   :  { %v3517_v55 = vpop.f32.mrb[18].mxu0 }
 0x22e   :  { %v1415_v50 = vpop.f32.mrb[19].mxu0 }
 0x26f   :  { %v3606_v3 = vpop.f32.mrb[12].mxu1 }
 0x270   :  { %v3662_v14 = vadd.f32 %v3606_v3, %v3516_v16  ;;  %v2462_v27 = vpop.f32.mrb[13].mxu1 }
 0x271   :  { %v3663_v48 = vadd.f32 %v2462_v27, %v1412_v6  ;;  %v3607_v44 = vpop.f32.mrb[14].mxu1 }
 0x272   :  { %v2550_v26 = vmul.f32 %v3662_v14, %v4885_v42  ;;  %v3664_v58 = vadd.f32 %v3607_v44, %v3517_v55  ;;  %v2465_v52 = vpop.f32.mrb[15].mxu1 }
 0x273   :  { %v2548_v24 = vmul.f32 %v3663_v48, %v4885_v42  ;;  %v3665_v49 = vadd.f32 %v2465_v52, %v1415_v50 }
 0x274   :  { %v2573_v21 = vadd.f32 %v4890_v56, %v2550_v26  ;;  %v2551_v43 = vmul.f32 %v3664_v58, %v4885_v42 }
 0x275   :  { %v2571_v7 = vadd.f32 %v4890_v56, %v2548_v24  ;;  %v2549_v20 = vmul.f32 %v3665_v49, %v4885_v42 }
 0x276   :  { %v2574_v35 = vadd.f32 %v4890_v56, %v2551_v43  ;;  %v2589_v0 = vmax.f32 %v2573_v21, 0.0 }
 0x277   :  { %v2572_v13 = vadd.f32 %v4890_v56, %v2549_v20  ;;  %v3610_v57 = vpop.f32.mrb[0].mxu1  ;;  %v2587_v1 = vmax.f32 %v2571_v7, 0.0 }
 0x278   :  { %v2590_v34 = vmax.f32 %v2574_v35, 0.0  ;;  %v3666_v8 = vadd.f32 %v3610_v57, %v3502_v15  ;;  %v2478_v51 = vpop.f32.mrb[1].mxu1 }
 0x279   :  { %v2588_v32 = vmax.f32 %v2572_v13, 0.0  ;;  %v3667_v23 = vadd.f32 %v2478_v51, %v1182_v9  ;;  %v3611_v12 = vpop.f32.mrb[2].mxu1 }
 0x27a   :  { %v2604_v39 = vpack.c.bf16 %v2590_v34, %v2589_v0  ;;  %v2554_v61 = vmul.f32 %v3666_v8, %v4885_v42  ;;  %v3668_v38 = vadd.f32 %v3611_v12, %v3503_v40  ;;  %v2481_v10 = vpop.f32.mrb[3].mxu1 }
 0x27b   :  { %v2603_v28 = vpack.c.bf16 %v2588_v32, %v2587_v1  ;;  %v2552_v25 = vmul.f32 %v3667_v23, %v4885_v42  ;;  %v3669_v33 = vadd.f32 %v2481_v10, %v1185_v63  ;;  %v2829_v10 = vld [vmem:[%s5179_s10 + $0x10] sm:$0xff] }
 0x27c   :  { %v2577_v47 = vadd.f32 %v4890_v56, %v2554_v61  ;;  %v2555_v4 = vmul.f32 %v3668_v38, %v4885_v42  ;;  %v3838_v61 = vmov 0.0|0.0  }
 0x27d   :  { %v2575_v11 = vadd.f32 %v4890_v56, %v2552_v25  ;;  %v2553_v59 = vmul.f32 %v3669_v33, %v4885_v42  ;;  %3622 = vmatprep.mubr.msk.bf16.mxu0 %vm308_vm1, %v2603_v28  ;;  %3654 = vmatprep.subr.bf16.mxu0 %v3838_v61  ;;  %v2830_v28 = vld [vmem:[%s5179_s10 + $0x18] sm:$0xff]  ;;  %v3840_v33 = vmov 0.0  }
 0x27e   :  { %v2578_v54 = vadd.f32 %v4890_v56, %v2555_v4  ;;  %3623 = vmatmul.mubr.msk.bf16.vlgmr.msra.gmra.mrb[32].mxu0 %vm308_vm1, %v2604_v39  ;;  %v2593_v22 = vmax.f32 %v2577_v47, 0.0  ;;  %v3658_v25 = vpack.c.bf16 %v2830_v28, %v2829_v10  ;;  %v4956_v47 = vld [vmem:[%s5180_s8] ss:$0 sm:$0xff] }
 0x27f   :  { %v2576_v2 = vadd.f32 %v4890_v56, %v2553_v59  ;;  %v3614_v30 = vpop.f32.mrb[4].mxu1  ;;  %v2591_v5 = vmax.f32 %v2575_v11, 0.0  ;;  %v4961_v11 = vld [vmem:[%s5181_s9] ss:$0 sm:$0xff] }
 0x280   :  { %v2594_v46 = vmax.f32 %v2578_v54, 0.0  ;;  %v3670_v62 = vadd.f32 %v3614_v30, %v3506_v17  ;;  %v2494_v53 = vpop.f32.mrb[5].mxu1 }
 0x281   :  { %v2592_v41 = vmax.f32 %v2576_v2, 0.0  ;;  %v3671_v60 = vadd.f32 %v2494_v53, %v1198_v45  ;;  %v3615_v15 = vpop.f32.mrb[6].mxu1 }
 0x282   :  { %v2606_v9 = vpack.c.bf16 %v2594_v46, %v2593_v22  ;;  %v2558_v40 = vmul.f32 %v3670_v62, %v4885_v42  ;;  %v3672_v63 = vadd.f32 %v3615_v15, %v4870_v19  ;;  %v2497_v16 = vpop.f32.mrb[7].mxu1 }
 0x283   :  { %v2605_v6 = vpack.c.bf16 %v2592_v41, %v2591_v5  ;;  %v2556_v55 = vmul.f32 %v3671_v60, %v4885_v42  ;;  %v3673_v50 = vadd.f32 %v2497_v16, %v4872_v29 }
 0x284   :  { %v2581_v3 = vadd.f32 %v4890_v56, %v2558_v40  ;;  %v2559_v17 = vmul.f32 %v3672_v63, %v4885_v42 }
 0x285   :  { %v2579_v14 = vadd.f32 %v4890_v56, %v2556_v55  ;;  %v2557_v45 = vmul.f32 %v3673_v50, %v4885_v42  ;;  %3626 = vmatprep.mubr.msk.bf16.mxu0 %vm308_vm1, %v2605_v6 }
 0x286   :  { %v2582_v27 = vadd.f32 %v4890_v56, %v2559_v17  ;;  %3627 = vmatmul.mubr.msk.bf16.gmra.mrb[36].mxu0 %vm308_vm1, %v2606_v9  ;;  %v2597_v44 = vmax.f32 %v2581_v3, 0.0 }
 0x287   :  { %v2580_v19 = vadd.f32 %v4890_v56, %v2557_v45  ;;  %v3618_v48 = vpop.f32.mrb[8].mxu1  ;;  %v2595_v52 = vmax.f32 %v2579_v14, 0.0 }
 0x288   :  { %v2598_v26 = vmax.f32 %v2582_v27, 0.0  ;;  %v3674_v29 = vadd.f32 %v3618_v48, %v4874_v31  ;;  %v2510_v58 = vpop.f32.mrb[9].mxu1 }
 0x289   :  { %v2596_v24 = vmax.f32 %v2580_v19, 0.0  ;;  %v3675_v49 = vadd.f32 %v2510_v58, %v4876_v18  ;;  %v3619_v21 = vpop.f32.mrb[10].mxu1 }
 0x28a   :  { %v2608_v43 = vpack.c.bf16 %v2598_v26, %v2597_v44  ;;  %v2562_v7 = vmul.f32 %v3674_v29, %v4885_v42  ;;  %v3676_v20 = vadd.f32 %v3619_v21, %v4878_v37  ;;  %v2513_v35 = vpop.f32.mrb[11].mxu1 }
 0x28b   :  { %v2607_v13 = vpack.c.bf16 %v2596_v24, %v2595_v52  ;;  %v2560_v57 = vmul.f32 %v3675_v49, %v4885_v42  ;;  %v3677_v0 = vadd.f32 %v2513_v35, %v4880_v36 }
 0x28c   :  { %v2585_v34 = vadd.f32 %v4890_v56, %v2562_v7  ;;  %v2563_v31 = vmul.f32 %v3676_v20, %v4885_v42 }
 0x28d   :  { %v2583_v8 = vadd.f32 %v4890_v56, %v2560_v57  ;;  %v2561_v18 = vmul.f32 %v3677_v0, %v4885_v42  ;;  %3630 = vmatprep.mubr.msk.bf16.mxu0 %vm308_vm1, %v2607_v13  ;;  %v2827_v42 = vld [vmem:[%s5179_s10] sm:$0xff] }
 0x28e   :  { %v2586_v51 = vadd.f32 %v4890_v56, %v2563_v31  ;;  %3631 = vmatmul.mubr.msk.bf16.gmra.mrb[40].mxu0 %vm308_vm1, %v2608_v43  ;;  %v2601_v1 = vmax.f32 %v2585_v34, 0.0 }
 0x28f   :  { %v2584_v37 = vadd.f32 %v4890_v56, %v2561_v18  ;;  %v2599_v23 = vmax.f32 %v2583_v8, 0.0  ;;  %v2828_v56 = vld [vmem:[%s5179_s10 + $0x8] sm:$0xff] }
 0x290   :  { %v2602_v32 = vmax.f32 %v2586_v51, 0.0  ;;  %v3655_v38 = vpack.c.bf16 %v2828_v56, %v2827_v42 }
 0x291   :  { %v2600_v36 = vmax.f32 %v2584_v37, 0.0 }
 0x292   :  { %v2610_v12 = vpack.c.bf16 %v2602_v32, %v2601_v1  ;;  %3656 = vmatpush3.bf16.msra.mxu0 %v3655_v38 }
 0x293   :  { %v2609_v39 = vpack.c.bf16 %v2600_v36, %v2599_v23  ;;  %3657 = vmatprep.subr.bf16.mxu0 %v3838_v61 }
 0x295   :  { %3634 = vmatprep.mubr.msk.bf16.mxu0 %vm308_vm1, %v2609_v39 }
 0x296   :  { %3635 = vmatmul.mubr.msk.bf16.gmra.mrb[44].mxu0 %vm308_vm1, %v2610_v12  ;;  %vm3839_vm1 = vmmov 0  }
 0x297   :  { %3646 = vmatprep.mubr.msk.f32.mxu0 %vm3839_vm1, %v3840_v33  ;;  %3659 = vmatpush3.bf16.msra.mxu0 %v3658_v25 }
 0x298   :  { %3649 = vmatprep.subr.mxu0 %v3840_v33 }
 0x351   :  { %v3624_v4 = vpop.f32.mrb[32].mxu0 }
 0x352   :  { %v2673_v59 = vpop.f32.mrb[33].mxu0  ;;  %v2745_v54 = vmul.f32 %v3624_v4, %v4956_v47 }
 0x353   :  { %v2743_v2 = vmul.f32 %v4956_v47, %v2673_v59  ;;  %v3625_v30 = vpop.f32.mrb[34].mxu0 }
 0x354   :  { %v2676_v22 = vpop.f32.mrb[35].mxu0  ;;  %v2746_v62 = vmul.f32 %v3625_v30, %v4956_v47  ;;  %v4971_v5 = vadd.f32 %v4961_v11, %v2745_v54 }
 0x355   :  { %v4966_v46 = vadd.f32 %v4961_v11, %v2743_v2  ;;  %v2744_v53 = vmul.f32 %v4956_v47, %v2676_v22 }
 0x356   :  { %v4979_v15 = vadd.f32 %v4961_v11, %v2746_v62  ;;  %v2785_v6 = vsel %vm5281_vm11, %v4971_v5, 0.0  ;;  %vm2913_vm11 = vcmask 1041408  }
 0x357   :  { %v4974_v41 = vadd.f32 %v4961_v11, %v2744_v53  ;;  %v2782_v60 = vsel %vm5279_vm14, %v4966_v46, 0.0  ;;  %vm5294_vm14 = vmmov %vm5288_vm0 }
 0x358   :  { %v2787_v45 = vsel %vm5282_vm4, %v4979_v15, 0.0  ;;  %vm5295_vm4 = vmmov %vm5288_vm0 }
 0x359   :  { %v2783_v9 = vsel %vm5280_vm8, %v4974_v41, 0.0  ;;  %v3628_v40 = vpop.f32.mrb[36].mxu0  ;;  %vm2833_vm8 = vcmask 1041409  }
 0x35a   :  { %v2784_v63 = vadd.f32 %v2783_v9, %v2782_v60  ;;  %v2689_v16 = vpop.f32.mrb[37].mxu0  ;;  %v2749_v55 = vmul.f32 %v3628_v40, %v4956_v47 }
 0x35b   :  { %v2747_v50 = vmul.f32 %v4956_v47, %v2689_v16  ;;  %v3629_v3 = vpop.f32.mrb[38].mxu0 }
 0x35c   :  { %v2786_v17 = vadd.f32 %v2785_v6, %v2784_v63  ;;  %v2692_v14 = vpop.f32.mrb[39].mxu0  ;;  %v4994_v44 = vadd.f32 %v4961_v11, %v2749_v55  ;;  %v2750_v29 = vmul.f32 %v3629_v3, %v4956_v47 }
 0x35d   :  { %v4990_v27 = vadd.f32 %v4961_v11, %v2747_v50  ;;  %v2748_v19 = vmul.f32 %v4956_v47, %v2692_v14 }
 0x35e   :  { %v2788_v48 = vadd.f32 %v2787_v45, %v2786_v17  ;;  %v2793_v7 = vsel %vm5285_vm9, %v4994_v44, 0.0  ;;  %v5007_v20 = vadd.f32 %v4961_v11, %v2750_v29 }
 0x35f   :  { %v2789_v26 = vsel %vm5283_vm5, %v4990_v27, 0.0  ;;  %v5000_v58 = vadd.f32 %v4961_v11, %v2748_v19  ;;  %vm2909_vm5 = vcmask 15360  }
 0x360   :  { %v2790_v52 = vadd.f32 %v2789_v26, %v2788_v48  ;;  %v2795_v51 = vsel %vm5286_vm13, %v5007_v20, 0.0 }
 0x361   :  { %v2791_v24 = vsel %vm5284_vm10, %v5000_v58, 0.0  ;;  %v3632_v49 = vpop.f32.mrb[40].mxu0 }
 0x362   :  { %v2792_v21 = vadd.f32 %v2791_v24, %v2790_v52  ;;  %v2705_v43 = vpop.f32.mrb[41].mxu0  ;;  %v2753_v35 = vmul.f32 %v3632_v49, %v4956_v47 }
 0x363   :  { %v2751_v13 = vmul.f32 %v4956_v47, %v2705_v43  ;;  %v3633_v57 = vpop.f32.mrb[42].mxu0 }
 0x364   :  { %v2794_v0 = vadd.f32 %v2793_v7, %v2792_v21  ;;  %v2708_v34 = vpop.f32.mrb[43].mxu0  ;;  %v2754_v8 = vmul.f32 %v3633_v57, %v4956_v47  ;;  %v5019_v37 = vadd.f32 %v4961_v11, %v2753_v35  ;;  %v2908_v7 = vld [vmem:[%s5182_s11] sm:$0x3] }
 0x365   :  { %v5012_v31 = vadd.f32 %v4961_v11, %v2751_v13  ;;  %v2752_v18 = vmul.f32 %v4956_v47, %v2708_v34 }
 0x366   :  { %v2796_v32 = vadd.f32 %v2795_v51, %v2794_v0  ;;  %v5027_v36 = vadd.f32 %v4961_v11, %v2754_v8  ;;  %v2806_v56 = vsel %vm5289_vm2, %v5019_v37, 0.0 }
 0x367   :  { %v5022_v1 = vadd.f32 %v4961_v11, %v2752_v18  ;;  %v2803_v23 = vsel %vm5287_vm3, %v5012_v31, 0.0 }
 0x368   :  { %v2797_v25 = vrot.slane %v2796_v32, 4  ;;  %v2808_v54 = vsel %vm5290_vm6, %v5027_v36, 0.0 }
 0x369   :  { %v2804_v12 = vsel %vm5288_vm0, %v5022_v1, 0.0  ;;  %v3636_v39 = vpop.f32.mrb[44].mxu0 }
 0x36a   :  { %v2805_v61 = vadd.f32 %v2804_v12, %v2803_v23  ;;  %v2721_v42 = vpop.f32.mrb[45].mxu0  ;;  %v2757_v38 = vmul.f32 %v3636_v39, %v4956_v47  ;;  %v2798_v40 = vadd.f32 %v2797_v25, %v2796_v32  ;;  %v3841_v23 = vmov 1966171168  }
 0x36b   :  { %v2755_v10 = vmul.f32 %v4956_v47, %v2721_v42  ;;  %v3637_v28 = vpop.f32.mrb[46].mxu0  ;;  %v2995_v12 = vunpack.c.l.s4 %v3841_v23 }
 0x36c   :  { %v2807_v4 = vadd.f32 %v2806_v56, %v2805_v61  ;;  %v2724_v59 = vpop.f32.mrb[47].mxu0  ;;  %v2758_v30 = vmul.f32 %v3637_v28, %v4956_v47  ;;  %v5043_v53 = vadd.f32 %v4961_v11, %v2757_v38  ;;  %v2799_v50 = vrot.slane %v2798_v40, 2  ;;  %v5296_v61 = vld [vmem:[#allocation3_spill] sm:$0xff] }
 0x36d   :  { %v5038_v2 = vadd.f32 %v4961_v11, %v2755_v10  ;;  %v2756_v22 = vmul.f32 %v4956_v47, %v2724_v59  ;;  %v2996_v39 = vunpack.c.0.s8 %v2995_v12  ;;  %v3829_v10 = vld [vmem:[%s5172_s0] sm:$0xff]  }
 0x36e   :  { %v2809_v62 = vadd.f32 %v2808_v54, %v2807_v4  ;;  %v5051_v16 = vadd.f32 %v4961_v11, %v2758_v30  ;;  %v2814_v47 = vsel %vm5293_vm7, %v5043_v53, 0.0  ;;  %v2800_v45 = vadd.f32 %v2799_v50, %v2798_v40  ;;  %v3830_v4 = vld [vmem:[%s5172_s0 + $0x8] sm:$0xff]   ;;  %v3831_v30 = vld [vmem:[%s5172_s0 + $0x10] sm:$0xff]  }
 0x36f   :  { %v2810_v60 = vsel %vm5291_vm12, %v5038_v2, 0.0  ;;  %v5048_v9 = vadd.f32 %v4961_v11, %v2756_v22  ;;  %v2999_v42 = vsub.s32 %v2996_v39, %v5296_v61  ;;  %v3042_v28 = vunpack.c.l.bf16 %v3829_v10 }
 0x370   :  { %v2811_v63 = vadd.f32 %v2810_v60, %v2809_v62  ;;  %v2816_v17 = vsel %vm5294_vm14, %v5051_v16, 0.0  ;;  %v2801_v29 = vrot.slane %v2800_v45, 1  ;;  %v3043_v25 = vunpack.c.h.bf16 %v3829_v10 }
 0x371   :  { %v2812_v6 = vsel %vm5292_vm15, %v5048_v9, 0.0  ;;  %v3044_v59 = vunpack.c.l.bf16 %v3830_v4  ;;  %v3045_v54 = vunpack.c.h.bf16 %v3830_v4  ;;  %v3046_v22 = vunpack.c.l.bf16 %v3831_v30 }
 0x372   :  { %v2813_v55 = vadd.f32 %v2812_v6, %v2811_v63  ;;  %v2802_v52 = vadd.f32 %v2801_v29, %v2800_v45  ;;  %v3047_v62 = vunpack.c.h.bf16 %v3831_v30  ;;  %v3832_v63 = vld [vmem:[%s5172_s0 + $0x18] sm:$0xff]  }
 0x373   :  { %v3048_v6 = vunpack.c.l.bf16 %v3832_v63 }
 0x374   :  { %v2815_v3 = vadd.f32 %v2814_v47, %v2813_v55  ;;  %v2825_v21 = vmul.f32 0.015625, %v2802_v52  ;;  %v3049_v55 = vunpack.c.h.bf16 %v3832_v63  ;;  %v3833_v47 = vld [vmem:[%s5172_s0 + $0x20] sm:$0xff]   ;;  %v3836_v52 = vld [vmem:[%s5172_s0 + $0x38] sm:$0xff]  }
 0x375   :  { %v3050_v50 = vunpack.c.l.bf16 %v3833_v47 }
 0x376   :  { %v2817_v14 = vadd.f32 %v2816_v17, %v2815_v3  ;;  %v3051_v3 = vunpack.c.h.bf16 %v3833_v47  ;;  %v3834_v17 = vld [vmem:[%s5172_s0 + $0x28] sm:$0xff]  }
 0x377   :  { %v3053_v45 = vunpack.c.h.bf16 %v3834_v17 }
 0x378   :  { %v2818_v19 = vrot.slane %v2817_v14, 4 }
 0x37a   :  { %v2819_v48 = vadd.f32 %v2818_v19, %v2817_v14  ;;  %v3052_v14 = vunpack.c.l.bf16 %v3834_v17 }
 0x37c   :  { %v2820_v26 = vrot.slane %v2819_v48, 2 }
 0x37e   :  { %v2821_v11 = vadd.f32 %v2820_v26, %v2819_v48  ;;  %v3835_v26 = vld [vmem:[%s5172_s0 + $0x30] sm:$0xff]  }
 0x37f   :  { %v3054_v29 = vunpack.c.l.bf16 %v3835_v26 }
 0x380   :  { %v2822_v24 = vrot.slane %v2821_v11, 1 }
 0x382   :  { %v2823_v49 = vadd.f32 %v2822_v24, %v2821_v11  ;;  %v3055_v11 = vunpack.c.h.bf16 %v3835_v26  ;;  %v3056_v24 = vunpack.c.l.bf16 %v3836_v52 }
 0x384   :  { %v2826_v43 = vmul.f32 0.015625, %v2823_v49  ;;  %v3057_v49 = vunpack.c.h.bf16 %v3836_v52 }
 0x386   :  { %v2834_v35 = vsel %vm2833_vm8, %v2826_v43, %v2825_v21 }
 0x387   :  { %3647 = vmatmul.mubr.msk.f32.vlgmr.msra.gmra.mrb[48].mxu0 %vm5295_vm4, %v2834_v35 }
 0x388   :  { %3650 = vmatpush3.msk.msra.mxu0 %vm2913_vm11, %v2908_v7  ;;  %3651 = vmatprep.mubr.msk.f32.mxu0 %vm3839_vm1, %v3840_v33  ;;  %v3018_v33 = vsub.s32 0, %v5296_v61  ;;  %vm3154_vm1 = vcmask 257024  }
 0x45a   :  { %v2903_v13 = vpop.f32.mrb[48].mxu0 }
 0x45b   :  { %v2907_v57 = vmax.f32 %v2903_v13, 0.0  ;;  %v3648_v0 = vpop.f32.mrb[49].mxu0 }
 0x45d   :  { %3652 = vmatmul.mubr.msk.f32.vlgmr.msra.gmra.mrb[50].mxu0 %vm2909_vm5, %v2907_v57 }
 0x530   :  { %v2983_v34 = vpop.f32.mrb[50].mxu0 }
 0x531   :  { %v3298_v8 = vmul.f32 -1.442695, %v2983_v34  ;;  %v3653_v18 = vpop.f32.mrb[51].mxu0 }
 0x533   :  { %3824 = vpow2.f32 %v3298_v8 }
 0x53d   :  { %v3825_v51 = vpop.eup %3824 }
 0x53e   :  { %v2990_v32 = vadd.f32 1.0, %v3825_v51 }
 0x540   :  { %3826 = vrcp.f32 %v2990_v32 }
 0x54a   :  { %v3827_v56 = vpop.eup %3826 }
 0x54b   :  { %v3000_v38 = vrot.slane %v3827_v56, %v2999_v42 }
 0x54d   :  { %v3001_v60 = vcombine.high %v3000_v38, %v3000_v38  ;;  %v3008_v40 = vrot.slane %v3000_v38, %v2999_v42 }
 0x54f   :  { %v3015_v19 = vrot.slane %v3001_v60, %v2999_v42  ;;  %v3019_v48 = vrot.slane %v3008_v40, %v3018_v33 }
 0x551   :  { %v3023_v21 = vrot.slane %v3015_v19, %v3018_v33  ;;  %v3026_v43 = vmul.f32 %v3019_v48, %v4966_v46  ;;  %v3027_v7 = vmul.f32 %v3019_v48, %v4974_v41  ;;  %v3028_v35 = vmul.f32 %v3019_v48, %v4971_v5 }
 0x552   :  { %v3029_v13 = vmul.f32 %v3019_v48, %v4979_v15  ;;  %v3030_v57 = vmul.f32 %v3019_v48, %v4990_v27  ;;  %v3031_v0 = vmul.f32 %v3019_v48, %v5000_v58  ;;  %v3032_v34 = vmul.f32 %v3019_v48, %v4994_v44 }
 0x553   :  { %v3033_v8 = vmul.f32 %v3019_v48, %v5007_v20  ;;  %v3034_v18 = vmul.f32 %v3023_v21, %v5012_v31  ;;  %v3035_v51 = vmul.f32 %v3023_v21, %v5022_v1  ;;  %v3036_v46 = vmul.f32 %v3023_v21, %v5019_v37 }
 0x554   :  { %v3037_v41 = vmul.f32 %v3023_v21, %v5027_v36  ;;  %v3038_v5 = vmul.f32 %v3023_v21, %v5038_v2  ;;  %v3039_v15 = vmul.f32 %v3023_v21, %v5048_v9  ;;  %v3040_v27 = vmul.f32 %v3023_v21, %v5043_v53 }
 0x555   :  { %v3041_v58 = vmul.f32 %v3023_v21, %v5051_v16  ;;  %v3058_v44 = vadd.f32 %v3042_v28, %v3026_v43  ;;  %v3059_v32 = vadd.f32 %v3043_v25, %v3027_v7  ;;  %v3060_v20 = vadd.f32 %v3044_v59, %v3028_v35 }
 0x556   :  { %v3061_v23 = vadd.f32 %v3045_v54, %v3029_v13  ;;  %v3062_v31 = vadd.f32 %v3046_v22, %v3030_v57  ;;  %v3063_v12 = vadd.f32 %v3047_v62, %v3031_v0  ;;  %v3064_v1 = vadd.f32 %v3048_v6, %v3032_v34 }
 0x557   :  { %v3065_v39 = vadd.f32 %v3049_v55, %v3033_v8  ;;  %v3066_v37 = vadd.f32 %v3050_v50, %v3034_v18  ;;  %v3067_v61 = vadd.f32 %v3051_v3, %v3035_v51  ;;  %v3068_v36 = vadd.f32 %v3052_v14, %v3036_v46 }
 0x558   :  { %v3069_v42 = vadd.f32 %v3053_v45, %v3037_v41  ;;  %v3070_v2 = vadd.f32 %v3054_v29, %v3038_v5  ;;  %v3071_v56 = vadd.f32 %v3055_v11, %v3039_v15  ;;  %v3072_v9 = vadd.f32 %v3056_v24, %v3040_v27 }
 0x559   :  { %v3073_v38 = vadd.f32 %v3057_v49, %v3041_v58  ;;  %v3074_v53 = vmax.f32 %v3058_v44, 0.0  ;;  %v3075_v33 = vmax.f32 %v3059_v32, 0.0  ;;  %v3076_v10 = vmax.f32 %v3060_v20, 0.0 }
 0x55a   :  { %v3077_v16 = vmax.f32 %v3061_v23, 0.0  ;;  %v3078_v28 = vmax.f32 %v3062_v31, 0.0  ;;  %v3079_v25 = vmax.f32 %v3063_v12, 0.0  ;;  %v3080_v4 = vmax.f32 %v3064_v1, 0.0 }
 0x55b   :  { %v3081_v59 = vmax.f32 %v3065_v39, 0.0  ;;  %v3082_v54 = vmax.f32 %v3066_v37, 0.0  ;;  %v3083_v30 = vmax.f32 %v3067_v61, 0.0  ;;  %v3084_v22 = vmax.f32 %v3068_v36, 0.0 }
 0x55c   :  { %v3085_v62 = vmax.f32 %v3069_v42, 0.0  ;;  %v3086_v60 = vmax.f32 %v3070_v2, 0.0  ;;  %v3087_v40 = vmax.f32 %v3071_v56, 0.0  ;;  %v3088_v63 = vmax.f32 %v3072_v9, 0.0 }
 0x55d   :  { %v3089_v6 = vmax.f32 %v3073_v38, 0.0  ;;  %v3315_v55 = vpack.c.bf16 %v3074_v53, %v3074_v53  ;;  %v3316_v47 = vpack.c.bf16 %v3075_v33, %v3075_v33  ;;  %v3317_v50 = vpack.c.bf16 %v3076_v10, %v3076_v10 }
 0x55e   :  { %v3318_v3 = vpack.c.bf16 %v3077_v16, %v3077_v16  ;;  %v3319_v17 = vpack.c.bf16 %v3078_v28, %v3078_v28  ;;  %v3320_v14 = vpack.c.bf16 %v3079_v25, %v3079_v25  ;;  %v3321_v45 = vpack.c.bf16 %v3080_v4, %v3080_v4 }
 0x55f   :  { %v3322_v19 = vpack.c.bf16 %v3081_v59, %v3081_v59  ;;  %v3323_v48 = vpack.c.bf16 %v3082_v54, %v3082_v54  ;;  %v3324_v26 = vpack.c.bf16 %v3083_v30, %v3083_v30  ;;  %v3325_v29 = vpack.c.bf16 %v3084_v22, %v3084_v22  ;;  %3155 = vst.msk [vmem:[%s5183_s12] sm:$0xf] %vm3154_vm1, %v3315_v55 }
 0x560   :  { %3156 = vst.msk [vmem:[%s5183_s12 + $0x4] sm:$0xf] %vm3154_vm1, %v3316_v47  ;;  %3157 = vst.msk [vmem:[%s5183_s12 + $0x8] sm:$0xf] %vm3154_vm1, %v3317_v50  ;;  %v3326_v11 = vpack.c.bf16 %v3085_v62, %v3085_v62  ;;  %v3327_v52 = vpack.c.bf16 %v3086_v60, %v3086_v60  ;;  %v3328_v24 = vpack.c.bf16 %v3087_v40, %v3087_v40 }
 0x561   :  { %v3329_v49 = vpack.c.bf16 %v3088_v63, %v3088_v63  ;;  %3158 = vst.msk [vmem:[%s5183_s12 + $0xc] sm:$0xf] %vm3154_vm1, %v3318_v3  ;;  %3159 = vst.msk [vmem:[%s5183_s12 + $0x10] sm:$0xf] %vm3154_vm1, %v3319_v17  ;;  %v3330_v21 = vpack.c.bf16 %v3089_v6, %v3089_v6 }
 0x562   :  { %3160 = vst.msk [vmem:[%s5183_s12 + $0x14] sm:$0xf] %vm3154_vm1, %v3320_v14  ;;  %3161 = vst.msk [vmem:[%s5183_s12 + $0x18] sm:$0xf] %vm3154_vm1, %v3321_v45 }
 0x563   :  { %3162 = vst.msk [vmem:[%s5183_s12 + $0x1c] sm:$0xf] %vm3154_vm1, %v3322_v19  ;;  %3163 = vst.msk [vmem:[%s5183_s12 + $0x20] sm:$0xf] %vm3154_vm1, %v3323_v48 }
 0x564   :  { %3164 = vst.msk [vmem:[%s5183_s12 + $0x24] sm:$0xf] %vm3154_vm1, %v3324_v26  ;;  %3165 = vst.msk [vmem:[%s5183_s12 + $0x28] sm:$0xf] %vm3154_vm1, %v3325_v29 }
 0x565   :  { %3166 = vst.msk [vmem:[%s5183_s12 + $0x2c] sm:$0xf] %vm3154_vm1, %v3326_v11  ;;  %3167 = vst.msk [vmem:[%s5183_s12 + $0x30] sm:$0xf] %vm3154_vm1, %v3327_v52 }
 0x566   :  { %3168 = vst.msk [vmem:[%s5183_s12 + $0x34] sm:$0xf] %vm3154_vm1, %v3328_v24  ;;  %3169 = vst.msk [vmem:[%s5183_s12 + $0x38] sm:$0xf] %vm3154_vm1, %v3329_v49 }
 0x567   :  { %3170 = vst.msk [vmem:[%s5183_s12 + $0x3c] sm:$0xf] %vm3154_vm1, %v3330_v21 }

</bundles_post_ra>
